<compile_context>
chip_gen: v5e
topology: v5e:2x2
jax: 0.10.0
libtpu: 0.0.40
codegen_flags: <defaults>
</compile_context>

<pallas_src>
import functools

import jax
import jax.numpy as jnp
from jax.experimental import pallas as pl
from jax.experimental.pallas import tpu as pltpu


def _round_up(x, m):
    return (x + m - 1) // m * m


# ----------------------------------------------------------------------------
# Kernel 1: tiled matmul + folded BatchNorm + optional ReLU (conv layers)
# ----------------------------------------------------------------------------
def _matmul_bn_act_kernel(x_ref, w_ref, scale_ref, shift_ref, o_ref, *, act):
    # x: [TM, K] bf16, w: [K, N] bf16, scale/shift: [1, N] f32
    y = jnp.dot(x_ref[...], w_ref[...], preferred_element_type=jnp.float32)
    y = y * scale_ref[...] + shift_ref[...]
    if act == "relu":
        y = jnp.maximum(y, 0.0)
    o_ref[...] = y.astype(o_ref.dtype)


def matmul_bn_act(x, w, scale, shift, act="none", tm=256):
    """act(bn(x @ w)); bn folded into per-output-channel scale/shift.

    M is tiled over a "parallel" grid axis (pipelined DMA, megacore-shardable);
    K and N are taken whole (K<=288, N<=128 here -> one MXU pass per tile).
    """
    M, K = x.shape
    K2, N = w.shape
    assert K == K2, (K, K2)
    x = x.astype(jnp.bfloat16)
    w = w.astype(jnp.bfloat16)
    scale = scale.reshape(1, N).astype(jnp.float32)
    shift = shift.reshape(1, N).astype(jnp.float32)

    tm_eff = tm if M >= tm else _round_up(M, 8)
    m_pad = _round_up(M, tm_eff)
    if m_pad > M:
        x = jnp.pad(x, ((0, m_pad - M), (0, 0)))
    grid = (m_pad // tm_eff,)

    cost = pl.CostEstimate(
        flops=2 * m_pad * K * N,
        transcendentals=0,
        bytes_accessed=m_pad * K * 2 + K * N * 2 + m_pad * N * 4 + 8 * N,
    )
    out = pl.pallas_call(
        functools.partial(_matmul_bn_act_kernel, act=act),
        out_shape=jax.ShapeDtypeStruct((m_pad, N), jnp.float32),
        grid=grid,
        in_specs=[
            pl.BlockSpec((tm_eff, K), lambda i: (i, 0)),
            pl.BlockSpec((K, N), lambda i: (0, 0)),
            pl.BlockSpec((1, N), lambda i: (0, 0)),
            pl.BlockSpec((1, N), lambda i: (0, 0)),
        ],
        out_specs=pl.BlockSpec((tm_eff, N), lambda i: (i, 0)),
        compiler_params=pltpu.CompilerParams(
            dimension_semantics=("parallel",),
            vmem_limit_bytes=32 * 1024 * 1024,   # v7x-safe (<< 64 MiB physical)
        ),
        cost_estimate=cost,
    )(x, w, scale, shift)
    return out[:M] if m_pad > M else out


# ----------------------------------------------------------------------------
# Kernel 2: fused FC stage: fc1->bn4->relu, then both heads + masked softmax
# ----------------------------------------------------------------------------
def _fc_heads_kernel(x_ref, w1_ref, s1_ref, b1_ref, w2_ref, s2_ref, b2_ref,
                     o_ref, *, n_cls):
    # h = relu(bn4(feat @ fc1_w^T)); kept in VMEM, never hits HBM
    h = jnp.dot(x_ref[...], w1_ref[...], preferred_element_type=jnp.float32)
    h = jnp.maximum(h * s1_ref[...] + b1_ref[...], 0.0)
    # both heads in one padded-to-128-lane matmul: cols [0,2)=fc2, [2,6)=fc3
    z = jnp.dot(h.astype(w2_ref.dtype), w2_ref[...],
                preferred_element_type=jnp.float32)
    z = z * s2_ref[...] + b2_ref[...]
    col = jax.lax.broadcasted_iota(jnp.int32, z.shape, 1)
    is_cls = col < n_cls
    zc = jnp.where(is_cls, z, -jnp.inf)              # keep pads out of softmax
    m = jnp.max(zc, axis=-1, keepdims=True)
    e = jnp.where(is_cls, jnp.exp(zc - m), 0.0)
    sm = e / jnp.sum(e, axis=-1, keepdims=True)
    # cols < n_cls: softmax(bn5(fc2)); remaining cols: bn6(fc3) / zero pads
    o_ref[...] = jnp.where(is_cls, sm, z).astype(o_ref.dtype)


def fc_heads(feat, w1, s1, b1, w2, s2, b2, n_cls, tm=256):
    M, K = feat.shape
    _, H = w1.shape
    _, N = w2.shape
    feat = feat.astype(jnp.bfloat16)
    s1 = s1.reshape(1, H).astype(jnp.float32)
    b1 = b1.reshape(1, H).astype(jnp.float32)
    s2 = s2.reshape(1, N).astype(jnp.float32)
    b2 = b2.reshape(1, N).astype(jnp.float32)

    tm_eff = tm if M >= tm else _round_up(M, 8)
    m_pad = _round_up(M, tm_eff)
    if m_pad > M:
        feat = jnp.pad(feat, ((0, m_pad - M), (0, 0)))
    grid = (m_pad // tm_eff,)

    cost = pl.CostEstimate(
        flops=2 * m_pad * (K * H + H * N),
        transcendentals=m_pad * N,
        bytes_accessed=m_pad * K * 2 + (K * H + H * N) * 2 + m_pad * N * 4,
    )
    out = pl.pallas_call(
        functools.partial(_fc_heads_kernel, n_cls=n_cls),
        out_shape=jax.ShapeDtypeStruct((m_pad, N), jnp.float32),
        grid=grid,
        in_specs=[
            pl.BlockSpec((tm_eff, K), lambda i: (i, 0)),
            pl.BlockSpec((K, H), lambda i: (0, 0)),
            pl.BlockSpec((1, H), lambda i: (0, 0)),
            pl.BlockSpec((1, H), lambda i: (0, 0)),
            pl.BlockSpec((H, N), lambda i: (0, 0)),
            pl.BlockSpec((1, N), lambda i: (0, 0)),
            pl.BlockSpec((1, N), lambda i: (0, 0)),
        ],
        out_specs=pl.BlockSpec((tm_eff, N), lambda i: (i, 0)),
        compiler_params=pltpu.CompilerParams(
            dimension_semantics=("parallel",),
            vmem_limit_bytes=32 * 1024 * 1024,
        ),
        cost_estimate=cost,
    )(feat, w1, s1, b1, w2, s2, b2)
    return out[:M] if m_pad > M else out


# ----------------------------------------------------------------------------
# Plain-JAX glue (fused by XLA): NHWC im2col, 2x2 max-pool, BN folding
# ----------------------------------------------------------------------------
def im2col_nhwc(x, k):
    """x: [B, H, W, C] -> [B*OH*OW, k*k*C], column order (kh, kw, c)."""
    B, H, W, C = x.shape
    OH, OW = H - k + 1, W - k + 1
    cols = [x[:, kh:kh + OH, kw:kw + OW, :] for kh in range(k) for kw in range(k)]
    p = jnp.stack(cols, axis=3)                           # [B, OH, OW, k*k, C]
    return p.reshape(B * OH * OW, k * k * C), OH, OW


def maxpool2x2_nhwc(x):
    """NHWC 2x2/stride-2 max pool (floor mode, like nn.MaxPool2d)."""
    B, H, W, C = x.shape
    H2, W2 = H // 2, W // 2
    x = x[:, : H2 * 2, : W2 * 2, :]
    return jnp.max(x.reshape(B, H2, 2, W2, 2, C), axis=(2, 4))


def fold_bn(gamma, beta, mean, var, eps=1e-5):
    scale = gamma / jnp.sqrt(var + eps)
    shift = beta - mean * scale
    return scale.astype(jnp.float32), shift.astype(jnp.float32)


def pack_conv_weight(w):
    """PyTorch [Cout, Cin, kh, kw] -> [round_up(kh*kw*Cin, 32), Cout] bf16,
    rows ordered (kh, kw, ci) to match NHWC im2col columns."""
    cout, cin, kh, kw = w.shape
    w2d = jnp.transpose(w, (2, 3, 1, 0)).reshape(kh * kw * cin, cout)
    k_pad = _round_up(w2d.shape[0], 32)
    if k_pad > w2d.shape[0]:
        w2d = jnp.pad(w2d, ((0, k_pad - w2d.shape[0]), (0, 0)))
    return w2d.astype(jnp.bfloat16)


# ----------------------------------------------------------------------------
# Parameter construction (deterministic, synthetic) + one-time packing
# ----------------------------------------------------------------------------
N_HEADS = 2 + 4       # fc2 (2 classes) + fc3 (4 outputs)
HEAD_PAD = 128        # lane-dense head output


def make_params(key):
    def conv_w(key, cout, cin, k):
        fan_in = cin * k * k
        return jax.random.normal(key, (cout, cin, k, k), jnp.float32) * jnp.sqrt(2.0 / fan_in)

    def lin_w(key, cout, cin):
        return jax.random.normal(key, (cout, cin), jnp.float32) * jnp.sqrt(2.0 / cin)

    def bn(key, n):
        k1, k2, k3, k4 = jax.random.split(key, 4)
        gamma = 0.5 + jax.random.uniform(k1, (n,), jnp.float32)   # [0.5, 1.5)
        beta = 0.1 * jax.random.normal(k2, (n,), jnp.float32)
        mean = 0.1 * jax.random.normal(k3, (n,), jnp.float32)     # running_mean
        var = 0.5 + jax.random.uniform(k4, (n,), jnp.float32)     # running_var > 0
        return fold_bn(gamma, beta, mean, var)

    keys = jax.random.split(key, 12)
    conv1_w = conv_w(keys[0], 32, 3, 3)
    conv2_w = conv_w(keys[1], 32, 32, 3)
    conv3_w = conv_w(keys[2], 64, 32, 3)
    fc1_w = lin_w(keys[3], 128, 64)      # PyTorch Linear weight: [out, in]
    fc2_w = lin_w(keys[4], 2, 128)
    fc3_w = lin_w(keys[5], 4, 128)
    bn1, bn2, bn3 = bn(keys[6], 32), bn(keys[7], 32), bn(keys[8], 64)
    bn4, bn5, bn6 = bn(keys[9], 128), bn(keys[10], 2), bn(keys[11], 4)

    # Kernel-ready layouts, packed once (no per-forward transposes/reshapes).
    p = {}
    p["conv1_w2d"], p["bn1"] = pack_conv_weight(conv1_w), bn1   # K 27 -> 32
    p["conv2_w2d"], p["bn2"] = pack_conv_weight(conv2_w), bn2   # K 288
    p["conv3_w2d"], p["bn3"] = pack_conv_weight(conv3_w), bn3   # K 288
    p["fc1_wT"] = fc1_w.T.astype(jnp.bfloat16)                  # [64, 128]
    p["bn4"] = bn4
    heads_w = jnp.concatenate([fc2_w.T, fc3_w.T], axis=1)       # [128, 6]
    heads_w = jnp.pad(heads_w, ((0, 0), (0, HEAD_PAD - N_HEADS)))
    p["heads_w"] = heads_w.astype(jnp.bfloat16)                 # [128, 128]
    p["heads_scale"] = jnp.concatenate(
        [bn5[0], bn6[0], jnp.ones((HEAD_PAD - N_HEADS,), jnp.float32)])
    p["heads_shift"] = jnp.concatenate(
        [bn5[1], bn6[1], jnp.zeros((HEAD_PAD - N_HEADS,), jnp.float32)])
    return p


# ----------------------------------------------------------------------------
# rnet forward (full=True path): conv-bn-relu-pool x3, fc1-bn-relu, two heads
# ----------------------------------------------------------------------------
def conv_block(x_nhwc, w2d, bn_sc_sh):
    B = x_nhwc.shape[0]
    patches, OH, OW = im2col_nhwc(x_nhwc, 3)
    K = patches.shape[1]
    k_pad = w2d.shape[0]
    patches = patches.astype(jnp.bfloat16)
    if k_pad > K:                         # pad contraction dim (conv1: 27->32)
        patches = jnp.pad(patches, ((0, 0), (0, k_pad - K)))
    y = matmul_bn_act(patches, w2d, bn_sc_sh[0], bn_sc_sh[1], act="relu")
    return y.reshape(B, OH, OW, w2d.shape[1])     # stays NHWC


def rnet_forward(params, x_nchw):
    x = jnp.transpose(x_nchw, (0, 2, 3, 1))       # NCHW -> NHWC, once

    y = conv_block(x, params["conv1_w2d"], params["bn1"])     # [B,22,22,32]
    y = maxpool2x2_nhwc(y)                                     # [B,11,11,32]
    y = conv_block(y, params["conv2_w2d"], params["bn2"])      # [B, 9, 9,32]
    y = maxpool2x2_nhwc(y)                                     # [B, 4, 4,32]
    y = conv_block(y, params["conv3_w2d"], params["bn3"])      # [B, 2, 2,64]
    y = maxpool2x2_nhwc(y)                                     # [B, 1, 1,64]

    # torch.reshape(x, (-1, 64)) on NCHW [B,64,1,1] -> [B,64]; spatial is 1x1
    # so the NHWC layout gives identical values.
    feat = y.reshape(-1, 64)

    # fused: h = relu(bn4(fc1(feat))); out1 = softmax(bn5(fc2(h))); out2 = bn6(fc3(h))
    out = fc_heads(feat, params["fc1_wT"], params["bn4"][0], params["bn4"][1],
                   params["heads_w"], params["heads_scale"],
                   params["heads_shift"], n_cls=2)
    out1 = out[:, :2]
    out2 = out[:, 2:2 + 4]
    return out1, out2


if __name__ == "__main__":
    key = jax.random.PRNGKey(0)
    k_param, k_input = jax.random.split(key)

    params = make_params(k_param)
    # 24x24 input is required so that three (conv k=3, pool 2x2) stages reduce
    # the spatial dims to 1x1, matching the reshape(-1, 64) in the module.
    x = jax.random.normal(k_input, (2, 3, 24, 24), jnp.float32)

    fwd = jax.jit(rnet_forward)
    out1, out2 = fwd(params, x)
    out1, out2 = jax.block_until_ready((out1, out2))

    assert out1.shape == (2, 2) and out2.shape == (2, 4)
    assert bool(jnp.all(jnp.isfinite(out1))) and bool(jnp.all(jnp.isfinite(out2)))
    # softmax rows must sum to 1
    assert bool(jnp.allclose(jnp.sum(out1, axis=1), 1.0, atol=1e-5))
    print("KERNEL_OK")
</pallas_src>

<mosaic_0001>
module attributes {stable_mosaic.version = 11 : i64} {
  func.func @_matmul_bn_act_kernel(%arg0: i32, %arg1: memref<256x32xbf16, #tpu.memory_space<vmem>>, %arg2: memref<32x32xbf16, #tpu.memory_space<vmem>>, %arg3: memref<1x32xf32, #tpu.memory_space<vmem>>, %arg4: memref<1x32xf32, #tpu.memory_space<vmem>>, %arg5: memref<256x32xf32, #tpu.memory_space<vmem>>) attributes {dimension_semantics = [#tpu.dimension_semantics<parallel>], iteration_bounds = array<i64: 4>, scalar_prefetch = 0 : i64, scratch_operands = 0 : i64, tpu.core_type = #tpu.core_type<tc>, window_params = [{transform_indices = @transform_0, window_bounds = array<i64: 256, 32>}, {pipeline_mode = #tpu.pipeline_mode<synchronous>, transform_indices = @transform_1, window_bounds = array<i64: 32, 32>}, {pipeline_mode = #tpu.pipeline_mode<synchronous>, transform_indices = @transform_2, window_bounds = array<i64: 1, 32>}, {pipeline_mode = #tpu.pipeline_mode<synchronous>, transform_indices = @transform_3, window_bounds = array<i64: 1, 32>}, {transform_indices = @transform_4, window_bounds = array<i64: 256, 32>}]} {
    %c0 = arith.constant 0 : index
    %c0_0 = arith.constant 0 : index
    %0 = vector.load %arg1[%c0, %c0_0] : memref<256x32xbf16, #tpu.memory_space<vmem>>, vector<256x32xbf16>
    %c0_1 = arith.constant 0 : index
    %c0_2 = arith.constant 0 : index
    %1 = vector.load %arg2[%c0_1, %c0_2] : memref<32x32xbf16, #tpu.memory_space<vmem>>, vector<32x32xbf16>
    %cst = arith.constant dense<0.000000e+00> : vector<256x32xf32>
    %2 = tpu.matmul %0, %1, %cst {dimension_numbers = #tpu.dot_dimension_numbers<[1], [0], [0], [1], [0, 0, 1, 1], [], []>} : vector<256x32xbf16>, vector<32x32xbf16>, vector<256x32xf32> -> vector<256x32xf32>
    %c0_3 = arith.constant 0 : index
    %c0_4 = arith.constant 0 : index
    %3 = vector.load %arg3[%c0_3, %c0_4] : memref<1x32xf32, #tpu.memory_space<vmem>>, vector<1x32xf32>
    %4 = vector.broadcast %3 : vector<1x32xf32> to vector<256x32xf32>
    %5 = arith.mulf %2, %4 : vector<256x32xf32>
    %c0_5 = arith.constant 0 : index
    %c0_6 = arith.constant 0 : index
    %6 = vector.load %arg4[%c0_5, %c0_6] : memref<1x32xf32, #tpu.memory_space<vmem>>, vector<1x32xf32>
    %7 = vector.broadcast %6 : vector<1x32xf32> to vector<256x32xf32>
    %8 = arith.addf %5, %7 : vector<256x32xf32>
    %cst_7 = arith.constant 0.000000e+00 : f32
    %9 = vector.broadcast %cst_7 : f32 to vector<256x32xf32>
    %10 = arith.maximumf %8, %9 : vector<256x32xf32>
    %c0_8 = arith.constant 0 : index
    %c0_9 = arith.constant 0 : index
    %11 = vector.load %arg5[%c0_8, %c0_9] : memref<256x32xf32, #tpu.memory_space<vmem>>, vector<256x32xf32>
    tpu.vector_store %arg5[%c0_8, %c0_9], %10 {strides = array<i32>} : memref<256x32xf32, #tpu.memory_space<vmem>>, vector<256x32xf32>,
    return
  }
  func.func @transform_0(%arg0: i32) -> (i32, i32) {
    %c0_i32 = arith.constant 0 : i32
    %c0_i32_0 = arith.constant 0 : i32
    return %arg0, %c0_i32 : i32, i32
  }
  func.func @transform_1(%arg0: i32) -> (i32, i32) {
    %c0_i32 = arith.constant 0 : i32
    %c0_i32_0 = arith.constant 0 : i32
    %c0_i32_1 = arith.constant 0 : i32
    return %c0_i32, %c0_i32_0 : i32, i32
  }
  func.func @transform_2(%arg0: i32) -> (i32, i32) {
    %c0_i32 = arith.constant 0 : i32
    %c0_i32_0 = arith.constant 0 : i32
    %c0_i32_1 = arith.constant 0 : i32
    return %c0_i32, %c0_i32_0 : i32, i32
  }
  func.func @transform_3(%arg0: i32) -> (i32, i32) {
    %c0_i32 = arith.constant 0 : i32
    %c0_i32_0 = arith.constant 0 : i32
    %c0_i32_1 = arith.constant 0 : i32
    return %c0_i32, %c0_i32_0 : i32, i32
  }
  func.func @transform_4(%arg0: i32) -> (i32, i32) {
    %c0_i32 = arith.constant 0 : i32
    %c0_i32_0 = arith.constant 0 : i32
    return %arg0, %c0_i32 : i32, i32
  }
}

module attributes {stable_mosaic.version = 11 : i64} {
  func.func @_matmul_bn_act_kernel(%arg0: i32, %arg1: memref<168x288xbf16, #tpu.memory_space<vmem>>, %arg2: memref<288x32xbf16, #tpu.memory_space<vmem>>, %arg3: memref<1x32xf32, #tpu.memory_space<vmem>>, %arg4: memref<1x32xf32, #tpu.memory_space<vmem>>, %arg5: memref<168x32xf32, #tpu.memory_space<vmem>>) attributes {dimension_semantics = [#tpu.dimension_semantics<parallel>], iteration_bounds = array<i64: 1>, scalar_prefetch = 0 : i64, scratch_operands = 0 : i64, tpu.core_type = #tpu.core_type<tc>, window_params = [{transform_indices = @transform_0, window_bounds = array<i64: 168, 288>}, {pipeline_mode = #tpu.pipeline_mode<synchronous>, transform_indices = @transform_1, window_bounds = array<i64: 288, 32>}, {pipeline_mode = #tpu.pipeline_mode<synchronous>, transform_indices = @transform_2, window_bounds = array<i64: 1, 32>}, {pipeline_mode = #tpu.pipeline_mode<synchronous>, transform_indices = @transform_3, window_bounds = array<i64: 1, 32>}, {transform_indices = @transform_4, window_bounds = array<i64: 168, 32>}]} {
    %c0 = arith.constant 0 : index
    %c0_0 = arith.constant 0 : index
    %0 = vector.load %arg1[%c0, %c0_0] : memref<168x288xbf16, #tpu.memory_space<vmem>>, vector<168x288xbf16>
    %c0_1 = arith.constant 0 : index
    %c0_2 = arith.constant 0 : index
    %1 = vector.load %arg2[%c0_1, %c0_2] : memref<288x32xbf16, #tpu.memory_space<vmem>>, vector<288x32xbf16>
    %cst = arith.constant dense<0.000000e+00> : vector<168x32xf32>
    %2 = tpu.matmul %0, %1, %cst {dimension_numbers = #tpu.dot_dimension_numbers<[1], [0], [0], [1], [0, 0, 1, 1], [], []>} : vector<168x288xbf16>, vector<288x32xbf16>, vector<168x32xf32> -> vector<168x32xf32>
    %c0_3 = arith.constant 0 : index
    %c0_4 = arith.constant 0 : index
    %3 = vector.load %arg3[%c0_3, %c0_4] : memref<1x32xf32, #tpu.memory_space<vmem>>, vector<1x32xf32>
    %4 = vector.broadcast %3 : vector<1x32xf32> to vector<168x32xf32>
    %5 = arith.mulf %2, %4 : vector<168x32xf32>
    %c0_5 = arith.constant 0 : index
    %c0_6 = arith.constant 0 : index
    %6 = vector.load %arg4[%c0_5, %c0_6] : memref<1x32xf32, #tpu.memory_space<vmem>>, vector<1x32xf32>
    %7 = vector.broadcast %6 : vector<1x32xf32> to vector<168x32xf32>
    %8 = arith.addf %5, %7 : vector<168x32xf32>
    %cst_7 = arith.constant 0.000000e+00 : f32
    %9 = vector.broadcast %cst_7 : f32 to vector<168x32xf32>
    %10 = arith.maximumf %8, %9 : vector<168x32xf32>
    %c0_8 = arith.constant 0 : index
    %c0_9 = arith.constant 0 : index
    %11 = vector.load %arg5[%c0_8, %c0_9] : memref<168x32xf32, #tpu.memory_space<vmem>>, vector<168x32xf32>
    tpu.vector_store %arg5[%c0_8, %c0_9], %10 {strides = array<i32>} : memref<168x32xf32, #tpu.memory_space<vmem>>, vector<168x32xf32>,
    return
  }
  func.func @transform_0(%arg0: i32) -> (i32, i32) {
    %c0_i32 = arith.constant 0 : i32
    %c0_i32_0 = arith.constant 0 : i32
    return %arg0, %c0_i32 : i32, i32
  }
  func.func @transform_1(%arg0: i32) -> (i32, i32) {
    %c0_i32 = arith.constant 0 : i32
    %c0_i32_0 = arith.constant 0 : i32
    %c0_i32_1 = arith.constant 0 : i32
    return %c0_i32, %c0_i32_0 : i32, i32
  }
  func.func @transform_2(%arg0: i32) -> (i32, i32) {
    %c0_i32 = arith.constant 0 : i32
    %c0_i32_0 = arith.constant 0 : i32
    %c0_i32_1 = arith.constant 0 : i32
    return %c0_i32, %c0_i32_0 : i32, i32
  }
  func.func @transform_3(%arg0: i32) -> (i32, i32) {
    %c0_i32 = arith.constant 0 : i32
    %c0_i32_0 = arith.constant 0 : i32
    %c0_i32_1 = arith.constant 0 : i32
    return %c0_i32, %c0_i32_0 : i32, i32
  }
  func.func @transform_4(%arg0: i32) -> (i32, i32) {
    %c0_i32 = arith.constant 0 : i32
    %c0_i32_0 = arith.constant 0 : i32
    return %arg0, %c0_i32 : i32, i32
  }
}

module attributes {stable_mosaic.version = 11 : i64} {
  func.func @_fc_heads_kernel(%arg0: i32, %arg1: memref<8x64xbf16, #tpu.memory_space<vmem>>, %arg2: memref<64x128xbf16, #tpu.memory_space<vmem>>, %arg3: memref<1x128xf32, #tpu.memory_space<vmem>>, %arg4: memref<1x128xf32, #tpu.memory_space<vmem>>, %arg5: memref<128x128xbf16, #tpu.memory_space<vmem>>, %arg6: memref<1x128xf32, #tpu.memory_space<vmem>>, %arg7: memref<1x128xf32, #tpu.memory_space<vmem>>, %arg8: memref<8x128xf32, #tpu.memory_space<vmem>>) attributes {dimension_semantics = [#tpu.dimension_semantics<parallel>], iteration_bounds = array<i64: 1>, scalar_prefetch = 0 : i64, scratch_operands = 0 : i64, tpu.core_type = #tpu.core_type<tc>, window_params = [{transform_indices = @transform_0, window_bounds = array<i64: 8, 64>}, {pipeline_mode = #tpu.pipeline_mode<synchronous>, transform_indices = @transform_1, window_bounds = array<i64: 64, 128>}, {pipeline_mode = #tpu.pipeline_mode<synchronous>, transform_indices = @transform_2, window_bounds = array<i64: 1, 128>}, {pipeline_mode = #tpu.pipeline_mode<synchronous>, transform_indices = @transform_3, window_bounds = array<i64: 1, 128>}, {pipeline_mode = #tpu.pipeline_mode<synchronous>, transform_indices = @transform_4, window_bounds = array<i64: 128, 128>}, {pipeline_mode = #tpu.pipeline_mode<synchronous>, transform_indices = @transform_5, window_bounds = array<i64: 1, 128>}, {pipeline_mode = #tpu.pipeline_mode<synchronous>, transform_indices = @transform_6, window_bounds = array<i64: 1, 128>}, {transform_indices = @transform_7, window_bounds = array<i64: 8, 128>}]} {
    %c0 = arith.constant 0 : index
    %c0_0 = arith.constant 0 : index
    %0 = vector.load %arg1[%c0, %c0_0] : memref<8x64xbf16, #tpu.memory_space<vmem>>, vector<8x64xbf16>
    %c0_1 = arith.constant 0 : index
    %c0_2 = arith.constant 0 : index
    %1 = vector.load %arg2[%c0_1, %c0_2] : memref<64x128xbf16, #tpu.memory_space<vmem>>, vector<64x128xbf16>
    %cst = arith.constant dense<0.000000e+00> : vector<8x128xf32>
    %2 = tpu.matmul %0, %1, %cst {dimension_numbers = #tpu.dot_dimension_numbers<[1], [0], [0], [1], [0, 0, 1, 1], [], []>} : vector<8x64xbf16>, vector<64x128xbf16>, vector<8x128xf32> -> vector<8x128xf32>
    %c0_3 = arith.constant 0 : index
    %c0_4 = arith.constant 0 : index
    %3 = vector.load %arg3[%c0_3, %c0_4] : memref<1x128xf32, #tpu.memory_space<vmem>>, vector<1x128xf32>
    %4 = vector.broadcast %3 : vector<1x128xf32> to vector<8x128xf32>
    %5 = arith.mulf %2, %4 : vector<8x128xf32>
    %c0_5 = arith.constant 0 : index
    %c0_6 = arith.constant 0 : index
    %6 = vector.load %arg4[%c0_5, %c0_6] : memref<1x128xf32, #tpu.memory_space<vmem>>, vector<1x128xf32>
    %7 = vector.broadcast %6 : vector<1x128xf32> to vector<8x128xf32>
    %8 = arith.addf %5, %7 : vector<8x128xf32>
    %cst_7 = arith.constant 0.000000e+00 : f32
    %9 = vector.broadcast %cst_7 : f32 to vector<8x128xf32>
    %10 = arith.maximumf %8, %9 : vector<8x128xf32>
    %11 = arith.truncf %10 : vector<8x128xf32> to vector<8x128xbf16>
    %c0_8 = arith.constant 0 : index
    %c0_9 = arith.constant 0 : index
    %12 = vector.load %arg5[%c0_8, %c0_9] : memref<128x128xbf16, #tpu.memory_space<vmem>>, vector<128x128xbf16>
    %cst_10 = arith.constant dense<0.000000e+00> : vector<8x128xf32>
    %13 = tpu.matmul %11, %12, %cst_10 {dimension_numbers = #tpu.dot_dimension_numbers<[1], [0], [0], [1], [0, 0, 1, 1], [], []>} : vector<8x128xbf16>, vector<128x128xbf16>, vector<8x128xf32> -> vector<8x128xf32>
    %c0_11 = arith.constant 0 : index
    %c0_12 = arith.constant 0 : index
    %14 = vector.load %arg6[%c0_11, %c0_12] : memref<1x128xf32, #tpu.memory_space<vmem>>, vector<1x128xf32>
    %15 = vector.broadcast %14 : vector<1x128xf32> to vector<8x128xf32>
    %16 = arith.mulf %13, %15 : vector<8x128xf32>
    %c0_13 = arith.constant 0 : index
    %c0_14 = arith.constant 0 : index
    %17 = vector.load %arg7[%c0_13, %c0_14] : memref<1x128xf32, #tpu.memory_space<vmem>>, vector<1x128xf32>
    %18 = vector.broadcast %17 : vector<1x128xf32> to vector<8x128xf32>
    %19 = arith.addf %16, %18 : vector<8x128xf32>
    %20 = tpu.iota {dimensions = array<i32: 1>} : vector<8x128xi32>
    %c2_i32 = arith.constant 2 : i32
    %21 = vector.broadcast %c2_i32 : i32 to vector<8x128xi32>
    %22 = arith.cmpi slt, %20, %21 : vector<8x128xi32>
    %cst_15 = arith.constant 0xFF800000 : f32
    %23 = vector.broadcast %cst_15 : f32 to vector<8x128xf32>
    %24 = arith.select %22, %19, %23 : vector<8x128xi1>, vector<8x128xf32>
    %cst_16 = arith.constant dense<0xFF800000> : vector<8xf32>
    %25 = vector.multi_reduction <maximumf>, %24, %cst_16 [1] : vector<8x128xf32> to vector<8xf32>
    %26 = vector.shape_cast %25 : vector<8xf32> to vector<8x1xf32>
    %27 = vector.broadcast %26 : vector<8x1xf32> to vector<8x128xf32>
    %28 = arith.subf %24, %27 : vector<8x128xf32>
    %29 = math.exp %28 : vector<8x128xf32>
    %cst_17 = arith.constant 0.000000e+00 : f32
    %30 = vector.broadcast %cst_17 : f32 to vector<8x128xf32>
    %31 = arith.select %22, %29, %30 : vector<8x128xi1>, vector<8x128xf32>
    %cst_18 = arith.constant dense<0.000000e+00> : vector<8xf32>
    %32 = vector.multi_reduction <add>, %31, %cst_18 [1] : vector<8x128xf32> to vector<8xf32>
    %33 = vector.shape_cast %32 : vector<8xf32> to vector<8x1xf32>
    %34 = vector.broadcast %33 : vector<8x1xf32> to vector<8x128xf32>
    %35 = arith.divf %31, %34 : vector<8x128xf32>
    %36 = arith.select %22, %35, %19 : vector<8x128xi1>, vector<8x128xf32>
    %c0_19 = arith.constant 0 : index
    %c0_20 = arith.constant 0 : index
    %37 = vector.load %arg8[%c0_19, %c0_20] : memref<8x128xf32, #tpu.memory_space<vmem>>, vector<8x128xf32>
    tpu.vector_store %arg8[%c0_19, %c0_20], %36 {strides = array<i32>} : memref<8x128xf32, #tpu.memory_space<vmem>>, vector<8x128xf32>,
    return
  }
  func.func @transform_0(%arg0: i32) -> (i32, i32) {
    %c0_i32 = arith.constant 0 : i32
    %c0_i32_0 = arith.constant 0 : i32
    return %arg0, %c0_i32 : i32, i32
  }
  func.func @transform_1(%arg0: i32) -> (i32, i32) {
    %c0_i32 = arith.constant 0 : i32
    %c0_i32_0 = arith.constant 0 : i32
    %c0_i32_1 = arith.constant 0 : i32
    return %c0_i32, %c0_i32_0 : i32, i32
  }
  func.func @transform_2(%arg0: i32) -> (i32, i32) {
    %c0_i32 = arith.constant 0 : i32
    %c0_i32_0 = arith.constant 0 : i32
    %c0_i32_1 = arith.constant 0 : i32
    return %c0_i32, %c0_i32_0 : i32, i32
  }
  func.func @transform_3(%arg0: i32) -> (i32, i32) {
    %c0_i32 = arith.constant 0 : i32
    %c0_i32_0 = arith.constant 0 : i32
    %c0_i32_1 = arith.constant 0 : i32
    return %c0_i32, %c0_i32_0 : i32, i32
  }
  func.func @transform_4(%arg0: i32) -> (i32, i32) {
    %c0_i32 = arith.constant 0 : i32
    %c0_i32_0 = arith.constant 0 : i32
    %c0_i32_1 = arith.constant 0 : i32
    return %c0_i32, %c0_i32_0 : i32, i32
  }
  func.func @transform_5(%arg0: i32) -> (i32, i32) {
    %c0_i32 = arith.constant 0 : i32
    %c0_i32_0 = arith.constant 0 : i32
    %c0_i32_1 = arith.constant 0 : i32
    return %c0_i32, %c0_i32_0 : i32, i32
  }
  func.func @transform_6(%arg0: i32) -> (i32, i32) {
    %c0_i32 = arith.constant 0 : i32
    %c0_i32_0 = arith.constant 0 : i32
    %c0_i32_1 = arith.constant 0 : i32
    return %c0_i32, %c0_i32_0 : i32, i32
  }
  func.func @transform_7(%arg0: i32) -> (i32, i32) {
    %c0_i32 = arith.constant 0 : i32
    %c0_i32_0 = arith.constant 0 : i32
    return %arg0, %c0_i32 : i32, i32
  }
}

module attributes {stable_mosaic.version = 11 : i64} {
  func.func @_matmul_bn_act_kernel(%arg0: i32, %arg1: memref<8x288xbf16, #tpu.memory_space<vmem>>, %arg2: memref<288x64xbf16, #tpu.memory_space<vmem>>, %arg3: memref<1x64xf32, #tpu.memory_space<vmem>>, %arg4: memref<1x64xf32, #tpu.memory_space<vmem>>, %arg5: memref<8x64xf32, #tpu.memory_space<vmem>>) attributes {dimension_semantics = [#tpu.dimension_semantics<parallel>], iteration_bounds = array<i64: 1>, scalar_prefetch = 0 : i64, scratch_operands = 0 : i64, tpu.core_type = #tpu.core_type<tc>, window_params = [{transform_indices = @transform_0, window_bounds = array<i64: 8, 288>}, {pipeline_mode = #tpu.pipeline_mode<synchronous>, transform_indices = @transform_1, window_bounds = array<i64: 288, 64>}, {pipeline_mode = #tpu.pipeline_mode<synchronous>, transform_indices = @transform_2, window_bounds = array<i64: 1, 64>}, {pipeline_mode = #tpu.pipeline_mode<synchronous>, transform_indices = @transform_3, window_bounds = array<i64: 1, 64>}, {transform_indices = @transform_4, window_bounds = array<i64: 8, 64>}]} {
    %c0 = arith.constant 0 : index
    %c0_0 = arith.constant 0 : index
    %0 = vector.load %arg1[%c0, %c0_0] : memref<8x288xbf16, #tpu.memory_space<vmem>>, vector<8x288xbf16>
    %c0_1 = arith.constant 0 : index
    %c0_2 = arith.constant 0 : index
    %1 = vector.load %arg2[%c0_1, %c0_2] : memref<288x64xbf16, #tpu.memory_space<vmem>>, vector<288x64xbf16>
    %cst = arith.constant dense<0.000000e+00> : vector<8x64xf32>
    %2 = tpu.matmul %0, %1, %cst {dimension_numbers = #tpu.dot_dimension_numbers<[1], [0], [0], [1], [0, 0, 1, 1], [], []>} : vector<8x288xbf16>, vector<288x64xbf16>, vector<8x64xf32> -> vector<8x64xf32>
    %c0_3 = arith.constant 0 : index
    %c0_4 = arith.constant 0 : index
    %3 = vector.load %arg3[%c0_3, %c0_4] : memref<1x64xf32, #tpu.memory_space<vmem>>, vector<1x64xf32>
    %4 = vector.broadcast %3 : vector<1x64xf32> to vector<8x64xf32>
    %5 = arith.mulf %2, %4 : vector<8x64xf32>
    %c0_5 = arith.constant 0 : index
    %c0_6 = arith.constant 0 : index
    %6 = vector.load %arg4[%c0_5, %c0_6] : memref<1x64xf32, #tpu.memory_space<vmem>>, vector<1x64xf32>
    %7 = vector.broadcast %6 : vector<1x64xf32> to vector<8x64xf32>
    %8 = arith.addf %5, %7 : vector<8x64xf32>
    %cst_7 = arith.constant 0.000000e+00 : f32
    %9 = vector.broadcast %cst_7 : f32 to vector<8x64xf32>
    %10 = arith.maximumf %8, %9 : vector<8x64xf32>
    %c0_8 = arith.constant 0 : index
    %c0_9 = arith.constant 0 : index
    %11 = vector.load %arg5[%c0_8, %c0_9] : memref<8x64xf32, #tpu.memory_space<vmem>>, vector<8x64xf32>
    tpu.vector_store %arg5[%c0_8, %c0_9], %10 {strides = array<i32>} : memref<8x64xf32, #tpu.memory_space<vmem>>, vector<8x64xf32>,
    return
  }
  func.func @transform_0(%arg0: i32) -> (i32, i32) {
    %c0_i32 = arith.constant 0 : i32
    %c0_i32_0 = arith.constant 0 : i32
    return %arg0, %c0_i32 : i32, i32
  }
  func.func @transform_1(%arg0: i32) -> (i32, i32) {
    %c0_i32 = arith.constant 0 : i32
    %c0_i32_0 = arith.constant 0 : i32
    %c0_i32_1 = arith.constant 0 : i32
    return %c0_i32, %c0_i32_0 : i32, i32
  }
  func.func @transform_2(%arg0: i32) -> (i32, i32) {
    %c0_i32 = arith.constant 0 : i32
    %c0_i32_0 = arith.constant 0 : i32
    %c0_i32_1 = arith.constant 0 : i32
    return %c0_i32, %c0_i32_0 : i32, i32
  }
  func.func @transform_3(%arg0: i32) -> (i32, i32) {
    %c0_i32 = arith.constant 0 : i32
    %c0_i32_0 = arith.constant 0 : i32
    %c0_i32_1 = arith.constant 0 : i32
    return %c0_i32, %c0_i32_0 : i32, i32
  }
  func.func @transform_4(%arg0: i32) -> (i32, i32) {
    %c0_i32 = arith.constant 0 : i32
    %c0_i32_0 = arith.constant 0 : i32
    return %arg0, %c0_i32 : i32, i32
  }
}

</mosaic_0001>

<bundles_post_ra>
// kernel: rnet_forward.4
= control target key start
LH: loop header
LB: loop body
LE: loop exit
PB: predicated region body
PF: predicated region fallthrough
CT: control target
= control target key end

     0   :  { %s826_s15 = smov 0   ;;  %s1027_s0 = inlined_call_operand.vmem [shape: bf16[1024,32], index: 0, kind: input, shape index: {}]   ;;  %s1028_s1 = inlined_call_operand.vmem [shape: bf16[32,32], index: 1, kind: input, shape index: {}]   ;;  %s1029_s2 = inlined_call_operand.vmem [shape: f32[1,32], index: 2, kind: input, shape index: {}]   ;;  %s1030_s3 = inlined_call_operand.vmem [shape: f32[1,32], index: 3, kind: input, shape index: {}]   ;;  %s1031_s4 = inlined_call_operand.vmem [shape: f32[1024,32], index: 4, kind: output, shape index: {}]  }
   0x1 LB: > { %s660_s16 = sadd.s32 4294967295, %s799_s15   ;;  %p664_p0 = scmp.ge.s32.totalorder %s799_s15, 1  ;;  %s799_s15 = sphi %s826_s15, %s14_s15  }
   0x2   : > { %p163_p1 = scmp.lt.s32.totalorder %s799_s15, 5 }
   0x4   : > { %p164_p2 = pnand %p664_p0, %p163_p1 }
   0x5   : > { %s665_s19 = sshll.u32 (!%p164_p2), %s660_s16, 5 }
   0x6   : > { %167 = sbr.rel (%p164_p2) target bundleno = 216 (0xd8), region = 36  ;;  %p190_p3 = scmp.lt.s32.totalorder (!%p164_p2), %s665_s19, 127 }
   0xb   : > { %v776_v0 = vld [vmem:[%s1028_s1 + $0x8] sm:$0xff]  ;;  %v775_v1 = vld [vmem:[%s1028_s1] sm:$0xff]  ;;  %s1033_s19 = smov (!%p190_p3, %s665_s19), 127  ;;  %vm330_vm0 = vcmask 261120  }
   0xc   : > { %385 = vmatpush.bf16.msra.mxu0 %v776_v0  ;;  %777 = vmatpush.bf16.msra.mxu1 %v776_v0  ;;  %s666_s22 = sshll.u32 %s1033_s19, 2  ;;  %v883_v18 = vld [vmem:[%s1029_s2] ss:$0 sm:$0xff]  ;;  %s668_s30 = sshll.u32 %s1033_s19, 3 }
   0xd   : > { %778 = vmatpush.bf16.msra.mxu2 %v776_v0  ;;  %779 = vmatpush.bf16.msra.mxu3 %v776_v0  ;;  %s846_s25 = scalar_lea.vmem %s1027_s0, %s666_s22  ;;  %v888_v19 = vld [vmem:[%s1030_s3] ss:$0 sm:$0xff]  ;;  %s898_s7 = scalar_lea.vmem %s1031_s4, %s668_s30 }
   0xe   : > { %v759_v2 = vld [vmem:[%s846_s25] sm:$0xff]  ;;  %v760_v6 = vld [vmem:[%s846_s25 + $0x8] sm:$0xff]  ;;  %v761_v10 = vld [vmem:[%s846_s25 + $0x10] sm:$0xff] }
   0xf   : > { %v763_v3 = vld [vmem:[%s846_s25 + $0x20] sm:$0xff]  ;;  %v764_v7 = vld [vmem:[%s846_s25 + $0x28] sm:$0xff]  ;;  %v765_v11 = vld [vmem:[%s846_s25 + $0x30] sm:$0xff] }
  0x10   : > { %386 = vmatpush.bf16.msra.mxu0 %v775_v1  ;;  %780 = vmatpush.bf16.msra.mxu1 %v775_v1  ;;  %v767_v4 = vld [vmem:[%s846_s25 + $0x40] sm:$0xff]  ;;  %v768_v8 = vld [vmem:[%s846_s25 + $0x48] sm:$0xff]  ;;  %v769_v12 = vld [vmem:[%s846_s25 + $0x50] sm:$0xff] }
  0x11   : > { %781 = vmatpush.bf16.msra.mxu2 %v775_v1  ;;  %782 = vmatpush.bf16.msra.mxu3 %v775_v1  ;;  %v771_v5 = vld [vmem:[%s846_s25 + $0x60] sm:$0xff]  ;;  %v772_v9 = vld [vmem:[%s846_s25 + $0x68] sm:$0xff]  ;;  %v773_v13 = vld [vmem:[%s846_s25 + $0x70] sm:$0xff] }
  0x12   : > { %v762_v14 = vld [vmem:[%s846_s25 + $0x18] sm:$0xff] }
  0x13   : > { %741 = vmatmul.msk.bf16.vlgmr.msra.gmra.mxu0 %vm330_vm0, %v759_v2  ;;  %745 = vmatmul.msk.bf16.vlgmr.msra.gmra.mxu1 %vm330_vm0, %v763_v3  ;;  %v766_v15 = vld [vmem:[%s846_s25 + $0x38] sm:$0xff] }
  0x14   : > { %749 = vmatmul.msk.bf16.vlgmr.msra.gmra.mxu2 %vm330_vm0, %v767_v4  ;;  %753 = vmatmul.msk.bf16.vlgmr.msra.gmra.mxu3 %vm330_vm0, %v771_v5  ;;  %v770_v16 = vld [vmem:[%s846_s25 + $0x58] sm:$0xff] }
  0x15   : > { %v774_v17 = vld [vmem:[%s846_s25 + $0x78] sm:$0xff] }
  0x23   : > { %742 = vmatmul.msk.bf16.gmra.mxu0 %vm330_vm0, %v760_v6  ;;  %746 = vmatmul.msk.bf16.gmra.mxu1 %vm330_vm0, %v764_v7 }
  0x24   : > { %750 = vmatmul.msk.bf16.gmra.mxu2 %vm330_vm0, %v768_v8  ;;  %754 = vmatmul.msk.bf16.gmra.mxu3 %vm330_vm0, %v772_v9 }
  0x33   : > { %743 = vmatmul.msk.bf16.gmra.mxu0 %vm330_vm0, %v761_v10  ;;  %747 = vmatmul.msk.bf16.gmra.mxu1 %vm330_vm0, %v765_v11 }
  0x34   : > { %751 = vmatmul.msk.bf16.gmra.mxu2 %vm330_vm0, %v769_v12  ;;  %755 = vmatmul.msk.bf16.gmra.mxu3 %vm330_vm0, %v773_v13 }
  0x43   : > { %744 = vmatmul.msk.bf16.gmra.mxu0 %vm330_vm0, %v762_v14  ;;  %748 = vmatmul.msk.bf16.gmra.mxu1 %vm330_vm0, %v766_v15 }
  0x44   : > { %752 = vmatmul.msk.bf16.gmra.mxu2 %vm330_vm0, %v770_v16  ;;  %756 = vmatmul.msk.bf16.gmra.mxu3 %vm330_vm0, %v774_v17 }
  0x90   : > { %v388_v20 = vpop.f32.mrf.mxu0  ;;  %v408_v21 = vpop.f32.mrf.mxu1 }
  0x91   : > { %v472_v22 = vmul.f32 %v883_v18, %v388_v20  ;;  %v480_v23 = vmul.f32 %v883_v18, %v408_v21 }
  0x93   : > { %v508_v24 = vadd.f32 %v888_v19, %v472_v22  ;;  %v516_v25 = vadd.f32 %v888_v19, %v480_v23 }
  0x95   : > { %v540_v26 = vmax.f32 %v508_v24, 0.0  ;;  %v548_v27 = vmax.f32 %v516_v25, 0.0 }
  0x97   : > { %572 = vst.msk [vmem:[%s898_s7] sm:$0xff] %vm330_vm0, %v540_v26  ;;  %v428_v28 = vpop.f32.mrf.mxu2  ;;  %v448_v29 = vpop.f32.mrf.mxu3 }
  0x98   : > { %580 = vst.msk [vmem:[%s898_s7 + $0x40] sm:$0xff] %vm330_vm0, %v548_v27  ;;  %v488_v30 = vmul.f32 %v883_v18, %v428_v28  ;;  %v496_v31 = vmul.f32 %v883_v18, %v448_v29  ;;  %v390_v32 = vpop.f32.mrf.mxu0  ;;  %v410_v33 = vpop.f32.mrf.mxu1 }
  0x99   : > { %v473_v34 = vmul.f32 %v883_v18, %v390_v32  ;;  %v481_v35 = vmul.f32 %v883_v18, %v410_v33 }
  0x9a   : > { %v524_v36 = vadd.f32 %v888_v19, %v488_v30  ;;  %v532_v37 = vadd.f32 %v888_v19, %v496_v31 }
  0x9b   : > { %v509_v38 = vadd.f32 %v888_v19, %v473_v34  ;;  %v517_v39 = vadd.f32 %v888_v19, %v481_v35 }
  0x9c   : > { %v556_v40 = vmax.f32 %v524_v36, 0.0  ;;  %v564_v41 = vmax.f32 %v532_v37, 0.0 }
  0x9d   : > { %v541_v42 = vmax.f32 %v509_v38, 0.0  ;;  %v549_v43 = vmax.f32 %v517_v39, 0.0 }
  0x9e   : > { %588 = vst.msk [vmem:[%s898_s7 + $0x80] sm:$0xff] %vm330_vm0, %v556_v40 }
  0x9f   : > { %596 = vst.msk [vmem:[%s898_s7 + $0xc0] sm:$0xff] %vm330_vm0, %v564_v41  ;;  %v430_v44 = vpop.f32.mrf.mxu2  ;;  %v450_v45 = vpop.f32.mrf.mxu3 }
  0xa0   : > { %573 = vst.msk [vmem:[%s898_s7 + $0x8] sm:$0xff] %vm330_vm0, %v541_v42  ;;  %v489_v46 = vmul.f32 %v883_v18, %v430_v44  ;;  %v497_v47 = vmul.f32 %v883_v18, %v450_v45  ;;  %v393_v48 = vpop.f32.mrf.mxu0  ;;  %v413_v49 = vpop.f32.mrf.mxu1 }
  0xa1   : > { %581 = vst.msk [vmem:[%s898_s7 + $0x48] sm:$0xff] %vm330_vm0, %v549_v43  ;;  %v474_v50 = vmul.f32 %v883_v18, %v393_v48  ;;  %v482_v51 = vmul.f32 %v883_v18, %v413_v49 }
  0xa2   : > { %v525_v52 = vadd.f32 %v888_v19, %v489_v46  ;;  %v533_v53 = vadd.f32 %v888_v19, %v497_v47 }
  0xa3   : > { %v510_v54 = vadd.f32 %v888_v19, %v474_v50  ;;  %v518_v55 = vadd.f32 %v888_v19, %v482_v51 }
  0xa4   : > { %v557_v56 = vmax.f32 %v525_v52, 0.0  ;;  %v565_v57 = vmax.f32 %v533_v53, 0.0 }
  0xa5   : > { %v542_v58 = vmax.f32 %v510_v54, 0.0  ;;  %v550_v59 = vmax.f32 %v518_v55, 0.0 }
  0xa6   : > { %589 = vst.msk [vmem:[%s898_s7 + $0x88] sm:$0xff] %vm330_vm0, %v557_v56 }
  0xa7   : > { %597 = vst.msk [vmem:[%s898_s7 + $0xc8] sm:$0xff] %vm330_vm0, %v565_v57  ;;  %v433_v60 = vpop.f32.mrf.mxu2  ;;  %v453_v61 = vpop.f32.mrf.mxu3 }
  0xa8   : > { %574 = vst.msk [vmem:[%s898_s7 + $0x10] sm:$0xff] %vm330_vm0, %v542_v58  ;;  %v490_v62 = vmul.f32 %v883_v18, %v433_v60  ;;  %v498_v63 = vmul.f32 %v883_v18, %v453_v61  ;;  %v395_v0 = vpop.f32.mrf.mxu0  ;;  %v415_v1 = vpop.f32.mrf.mxu1 }
  0xa9   : > { %582 = vst.msk [vmem:[%s898_s7 + $0x50] sm:$0xff] %vm330_vm0, %v550_v59  ;;  %v475_v2 = vmul.f32 %v883_v18, %v395_v0  ;;  %v483_v3 = vmul.f32 %v883_v18, %v415_v1 }
  0xaa   : > { %v526_v4 = vadd.f32 %v888_v19, %v490_v62  ;;  %v534_v5 = vadd.f32 %v888_v19, %v498_v63 }
  0xab   : > { %v511_v6 = vadd.f32 %v888_v19, %v475_v2  ;;  %v519_v7 = vadd.f32 %v888_v19, %v483_v3 }
  0xac   : > { %v558_v8 = vmax.f32 %v526_v4, 0.0  ;;  %v566_v9 = vmax.f32 %v534_v5, 0.0 }
  0xad   : > { %v543_v10 = vmax.f32 %v511_v6, 0.0  ;;  %v551_v11 = vmax.f32 %v519_v7, 0.0 }
  0xae   : > { %590 = vst.msk [vmem:[%s898_s7 + $0x90] sm:$0xff] %vm330_vm0, %v558_v8 }
  0xaf   : > { %598 = vst.msk [vmem:[%s898_s7 + $0xd0] sm:$0xff] %vm330_vm0, %v566_v9  ;;  %v435_v12 = vpop.f32.mrf.mxu2  ;;  %v455_v13 = vpop.f32.mrf.mxu3 }
  0xb0   : > { %575 = vst.msk [vmem:[%s898_s7 + $0x18] sm:$0xff] %vm330_vm0, %v543_v10  ;;  %v491_v14 = vmul.f32 %v883_v18, %v435_v12  ;;  %v499_v15 = vmul.f32 %v883_v18, %v455_v13  ;;  %v398_v16 = vpop.f32.mrf.mxu0  ;;  %v418_v17 = vpop.f32.mrf.mxu1 }
  0xb1   : > { %583 = vst.msk [vmem:[%s898_s7 + $0x58] sm:$0xff] %vm330_vm0, %v551_v11  ;;  %v476_v20 = vmul.f32 %v883_v18, %v398_v16  ;;  %v484_v21 = vmul.f32 %v883_v18, %v418_v17 }
  0xb2   : > { %v527_v22 = vadd.f32 %v888_v19, %v491_v14  ;;  %v535_v23 = vadd.f32 %v888_v19, %v499_v15 }
  0xb3   : > { %v512_v24 = vadd.f32 %v888_v19, %v476_v20  ;;  %v520_v25 = vadd.f32 %v888_v19, %v484_v21 }
  0xb4   : > { %v559_v26 = vmax.f32 %v527_v22, 0.0  ;;  %v567_v27 = vmax.f32 %v535_v23, 0.0 }
  0xb5   : > { %v544_v28 = vmax.f32 %v512_v24, 0.0  ;;  %v552_v29 = vmax.f32 %v520_v25, 0.0 }
  0xb6   : > { %591 = vst.msk [vmem:[%s898_s7 + $0x98] sm:$0xff] %vm330_vm0, %v559_v26 }
  0xb7   : > { %599 = vst.msk [vmem:[%s898_s7 + $0xd8] sm:$0xff] %vm330_vm0, %v567_v27  ;;  %v438_v30 = vpop.f32.mrf.mxu2  ;;  %v458_v31 = vpop.f32.mrf.mxu3 }
  0xb8   : > { %576 = vst.msk [vmem:[%s898_s7 + $0x20] sm:$0xff] %vm330_vm0, %v544_v28  ;;  %v492_v32 = vmul.f32 %v883_v18, %v438_v30  ;;  %v500_v33 = vmul.f32 %v883_v18, %v458_v31  ;;  %v400_v34 = vpop.f32.mrf.mxu0  ;;  %v420_v35 = vpop.f32.mrf.mxu1 }
  0xb9   : > { %584 = vst.msk [vmem:[%s898_s7 + $0x60] sm:$0xff] %vm330_vm0, %v552_v29  ;;  %v477_v36 = vmul.f32 %v883_v18, %v400_v34  ;;  %v485_v37 = vmul.f32 %v883_v18, %v420_v35 }
  0xba   : > { %v528_v38 = vadd.f32 %v888_v19, %v492_v32  ;;  %v536_v39 = vadd.f32 %v888_v19, %v500_v33 }
  0xbb   : > { %v513_v40 = vadd.f32 %v888_v19, %v477_v36  ;;  %v521_v41 = vadd.f32 %v888_v19, %v485_v37 }
  0xbc   : > { %v560_v42 = vmax.f32 %v528_v38, 0.0  ;;  %v568_v43 = vmax.f32 %v536_v39, 0.0 }
  0xbd   : > { %v545_v44 = vmax.f32 %v513_v40, 0.0  ;;  %v553_v45 = vmax.f32 %v521_v41, 0.0 }
  0xbe   : > { %592 = vst.msk [vmem:[%s898_s7 + $0xa0] sm:$0xff] %vm330_vm0, %v560_v42 }
  0xbf   : > { %600 = vst.msk [vmem:[%s898_s7 + $0xe0] sm:$0xff] %vm330_vm0, %v568_v43  ;;  %v440_v46 = vpop.f32.mrf.mxu2  ;;  %v460_v47 = vpop.f32.mrf.mxu3 }
  0xc0   : > { %577 = vst.msk [vmem:[%s898_s7 + $0x28] sm:$0xff] %vm330_vm0, %v545_v44  ;;  %v493_v48 = vmul.f32 %v883_v18, %v440_v46  ;;  %v501_v49 = vmul.f32 %v883_v18, %v460_v47  ;;  %v403_v50 = vpop.f32.mrf.mxu0  ;;  %v423_v51 = vpop.f32.mrf.mxu1 }
  0xc1   : > { %585 = vst.msk [vmem:[%s898_s7 + $0x68] sm:$0xff] %vm330_vm0, %v553_v45  ;;  %v478_v52 = vmul.f32 %v883_v18, %v403_v50  ;;  %v486_v53 = vmul.f32 %v883_v18, %v423_v51 }
  0xc2   : > { %v529_v54 = vadd.f32 %v888_v19, %v493_v48  ;;  %v537_v55 = vadd.f32 %v888_v19, %v501_v49 }
  0xc3   : > { %v514_v56 = vadd.f32 %v888_v19, %v478_v52  ;;  %v522_v57 = vadd.f32 %v888_v19, %v486_v53 }
  0xc4   : > { %v561_v58 = vmax.f32 %v529_v54, 0.0  ;;  %v569_v59 = vmax.f32 %v537_v55, 0.0 }
  0xc5   : > { %v546_v60 = vmax.f32 %v514_v56, 0.0  ;;  %v554_v61 = vmax.f32 %v522_v57, 0.0 }
  0xc6   : > { %593 = vst.msk [vmem:[%s898_s7 + $0xa8] sm:$0xff] %vm330_vm0, %v561_v58 }
  0xc7   : > { %601 = vst.msk [vmem:[%s898_s7 + $0xe8] sm:$0xff] %vm330_vm0, %v569_v59  ;;  %v443_v62 = vpop.f32.mrf.mxu2  ;;  %v463_v63 = vpop.f32.mrf.mxu3 }
  0xc8   : > { %578 = vst.msk [vmem:[%s898_s7 + $0x30] sm:$0xff] %vm330_vm0, %v546_v60  ;;  %v494_v0 = vmul.f32 %v883_v18, %v443_v62  ;;  %v502_v1 = vmul.f32 %v883_v18, %v463_v63  ;;  %v405_v2 = vpop.f32.mrf.mxu0  ;;  %v425_v3 = vpop.f32.mrf.mxu1 }
  0xc9   : > { %586 = vst.msk [vmem:[%s898_s7 + $0x70] sm:$0xff] %vm330_vm0, %v554_v61  ;;  %v479_v4 = vmul.f32 %v883_v18, %v405_v2  ;;  %v487_v5 = vmul.f32 %v883_v18, %v425_v3 }
  0xca   : > { %v530_v6 = vadd.f32 %v888_v19, %v494_v0  ;;  %v538_v7 = vadd.f32 %v888_v19, %v502_v1 }
  0xcb   : > { %v515_v8 = vadd.f32 %v888_v19, %v479_v4  ;;  %v523_v9 = vadd.f32 %v888_v19, %v487_v5 }
  0xcc   : > { %v562_v10 = vmax.f32 %v530_v6, 0.0  ;;  %v570_v11 = vmax.f32 %v538_v7, 0.0 }
  0xcd   : > { %v547_v12 = vmax.f32 %v515_v8, 0.0  ;;  %v555_v13 = vmax.f32 %v523_v9, 0.0 }
  0xce   : > { %594 = vst.msk [vmem:[%s898_s7 + $0xb0] sm:$0xff] %vm330_vm0, %v562_v10 }
  0xcf   : > { %602 = vst.msk [vmem:[%s898_s7 + $0xf0] sm:$0xff] %vm330_vm0, %v570_v11  ;;  %v445_v14 = vpop.f32.mrf.mxu2  ;;  %v465_v15 = vpop.f32.mrf.mxu3 }
  0xd0   : > { %579 = vst.msk [vmem:[%s898_s7 + $0x38] sm:$0xff] %vm330_vm0, %v547_v12  ;;  %v495_v16 = vmul.f32 %v883_v18, %v445_v14  ;;  %v503_v17 = vmul.f32 %v883_v18, %v465_v15 }
  0xd1   : > { %587 = vst.msk [vmem:[%s898_s7 + $0x78] sm:$0xff] %vm330_vm0, %v555_v13 }
  0xd2   : > { %v531_v20 = vadd.f32 %v888_v19, %v495_v16  ;;  %v539_v21 = vadd.f32 %v888_v19, %v503_v17 }
  0xd4   : > { %v563_v22 = vmax.f32 %v531_v20, 0.0  ;;  %v571_v23 = vmax.f32 %v539_v21, 0.0 }
  0xd6   : > { %595 = vst.msk [vmem:[%s898_s7 + $0xb8] sm:$0xff] %vm330_vm0, %v563_v22 }
  0xd7   : > { %603 = vst.msk [vmem:[%s898_s7 + $0xf8] sm:$0xff] %vm330_vm0, %v571_v23 }
  0xd8 PF: > { %s14_s15 = sadd.s32 1, %s799_s15  }
  0xd9   : > { %p11_p4 = scmp.ge.s32.totalorder %s14_s15, 6  }
  0xdb   :  { %13 = sbr.rel (!%p11_p4) target bundleno = 1 (0x1), region = 66 }

// kernel: rnet_forward.5
= control target key start
LH: loop header
LB: loop body
LE: loop exit
PB: predicated region body
PF: predicated region fallthrough
CT: control target
= control target key end

     0   :  { %vm364_vm0 = vcmask 261120   ;;  %s1409_s1 = inlined_call_operand.vmem [shape: bf16[288,32], index: 1, kind: input, shape index: {}]   ;;  %s1410_s0 = inlined_call_operand.vmem [shape: bf16[168,288], index: 0, kind: input, shape index: {}]   ;;  %s1411_s2 = inlined_call_operand.vmem [shape: f32[1,32], index: 2, kind: input, shape index: {}]   ;;  %s1412_s3 = inlined_call_operand.vmem [shape: f32[1,32], index: 3, kind: input, shape index: {}]   ;;  %s1413_s4 = inlined_call_operand.vmem [shape: f32[168,32], index: 4, kind: output, shape index: {}]  }
   0x1   :  { %v923_v0 = vld [vmem:[%s1409_s1 + $0x38] sm:$0xff]  ;;  %v990_v2 = vld [vmem:[%s1409_s1 + $0x88] sm:$0xff]  ;;  %v922_v3 = vld [vmem:[%s1409_s1 + $0x30] sm:$0xff] }
   0x2   :  { %v985_v1 = vld [vmem:[%s1409_s1 + $0x78] sm:$0xff]  ;;  %398 = vmatpush.bf16.msra.mxu0 %v923_v0  ;;  %934 = vmatpush.bf16.msra.mxu3 %v923_v0  ;;  %v998_v4 = vld [vmem:[%s1409_s1 + $0x70] sm:$0xff]  ;;  %v1005_v5 = vld [vmem:[%s1409_s1 + $0x80] sm:$0xff] }
   0x3   :  { %461 = vmatpush.bf16.msra.mxu1 %v985_v1  ;;  %530 = vmatpush.bf16.msra.mxu2 %v990_v2  ;;  %v693_v6 = vld [vmem:[%s1410_s0 + $0x8] sm:$0xf]  ;;  %v888_v7 = vld [vmem:[%s1410_s0 + $0x10] sm:$0xf0]  ;;  %v920_v11 = vld [vmem:[%s1409_s1 + $0x20] sm:$0xff] }
   0x4   :  { %v694_v8 = vor.u32 %v888_v7, %v693_v6  ;;  %v921_v9 = vld [vmem:[%s1409_s1 + $0x28] sm:$0xff]  ;;  %v928_v12 = vld [vmem:[%s1409_s1 + $0x60] sm:$0xff]  ;;  %v919_v13 = vld [vmem:[%s1409_s1 + $0x18] sm:$0xff] }
   0x5   :  { %v929_v10 = vld [vmem:[%s1409_s1 + $0x68] sm:$0xff]  ;;  %v927_v14 = vld [vmem:[%s1409_s1 + $0x58] sm:$0xff]  ;;  %v918_v15 = vld [vmem:[%s1409_s1 + $0x10] sm:$0xff] }
   0x6   :  { %399 = vmatpush.bf16.msra.mxu0 %v922_v3  ;;  %935 = vmatpush.bf16.msra.mxu3 %v922_v3  ;;  %v926_v16 = vld [vmem:[%s1409_s1 + $0x50] sm:$0xff]  ;;  %v705_v17 = vld [vmem:[%s1410_s0 + $0x20] sm:$0xf]  ;;  %v891_v18 = vld [vmem:[%s1410_s0 + $0x28] sm:$0xf0] }
   0x7   :  { %462 = vmatpush.bf16.msra.mxu1 %v998_v4  ;;  %531 = vmatpush.bf16.msra.mxu2 %v1005_v5  ;;  %v706_v19 = vor.u32 %v891_v18, %v705_v17  ;;  %v917_v20 = vld [vmem:[%s1409_s1 + $0x8] sm:$0xff]  ;;  %v916_v22 = vld [vmem:[%s1409_s1] sm:$0xff]  ;;  %v687_v29 = vld [vmem:[%s1410_s0 + $0xc] sm:$0xf0] }
   0x8   :  { %v925_v21 = vld [vmem:[%s1409_s1 + $0x48] sm:$0xff]  ;;  %v924_v23 = vld [vmem:[%s1409_s1 + $0x40] sm:$0xff]  ;;  %v717_v33 = vld [vmem:[%s1410_s0 + $0x38] sm:$0xf] }
   0x9   :  { %v685_v24 = vld [vmem:[%s1410_s0] sm:$0xf]  ;;  %v887_v25 = vld [vmem:[%s1410_s0 + $0x8] sm:$0xf0]  ;;  %v886_v28 = vld [vmem:[%s1410_s0 + $0x4] sm:$0xf] }
   0xa   :  { %875 = vmatmul.msk.bf16.vlgmr.msra.gmra.mxu2 %vm364_vm0, %v694_v8  ;;  %400 = vmatpush.bf16.msra.mxu0 %v921_v9  ;;  %v781_v26 = vld [vmem:[%s1410_s0 + $0xc0] sm:$0xf]  ;;  %v911_v27 = vld [vmem:[%s1410_s0 + $0xc8] sm:$0xf0]  ;;  %v686_v30 = vor.u32 %v887_v25, %v685_v24  ;;  %v690_v32 = vor.u32 %v886_v28, %v687_v29  ;;  %v894_v34 = vld [vmem:[%s1410_s0 + $0x40] sm:$0xf0] }
   0xb   :  { %936 = vmatpush.bf16.msra.mxu3 %v921_v9  ;;  %463 = vmatpush.bf16.msra.mxu1 %v929_v10  ;;  %v782_v31 = vor.u32 %v911_v27, %v781_v26  ;;  %v718_v35 = vor.u32 %v894_v34, %v717_v33  ;;  %v697_v36 = vld [vmem:[%s1410_s0 + $0x18] sm:$0xf]  ;;  %v890_v37 = vld [vmem:[%s1410_s0 + $0x20] sm:$0xf0]  ;;  %v889_v40 = vld [vmem:[%s1410_s0 + $0x1c] sm:$0xf] }
   0xc   :  { %v793_v38 = vld [vmem:[%s1410_s0 + $0xd8] sm:$0xf]  ;;  %v914_v39 = vld [vmem:[%s1410_s0 + $0xe0] sm:$0xf0]  ;;  %v699_v41 = vld [vmem:[%s1410_s0 + $0x24] sm:$0xf0]  ;;  %v698_v42 = vor.u32 %v890_v37, %v697_v36 }
   0xd   :  { %v794_v43 = vor.u32 %v914_v39, %v793_v38  ;;  %v702_v44 = vor.u32 %v889_v40, %v699_v41  ;;  %v729_v45 = vld [vmem:[%s1410_s0 + $0x50] sm:$0xf]  ;;  %v897_v46 = vld [vmem:[%s1410_s0 + $0x58] sm:$0xf0]  ;;  %v892_v52 = vld [vmem:[%s1410_s0 + $0x34] sm:$0xf] }
   0xe   :  { %401 = vmatpush.bf16.msra.mxu0 %v920_v11  ;;  %v730_v47 = vor.u32 %v897_v46, %v729_v45  ;;  %v58_v48 = vld [vmem:[%s1410_s0 + $0xf0] sm:$0xff]  ;;  %v893_v50 = vld [vmem:[%s1410_s0 + $0x38] sm:$0xf0]  ;;  %v711_v53 = vld [vmem:[%s1410_s0 + $0x3c] sm:$0xf0] }
   0xf   :  { %937 = vmatpush.bf16.msra.mxu3 %v920_v11  ;;  %464 = vmatpush.bf16.msra.mxu1 %v928_v12  ;;  %v709_v49 = vld [vmem:[%s1410_s0 + $0x30] sm:$0xf]  ;;  %v198_v51 = vunpack.c.l.b16 %v58_v48  ;;  %v714_v56 = vor.u32 %v892_v52, %v711_v53  ;;  %v741_v57 = vld [vmem:[%s1410_s0 + $0x68] sm:$0xf]  ;;  %v900_v58 = vld [vmem:[%s1410_s0 + $0x70] sm:$0xf0] }
  0x10   :  { %v710_v54 = vor.u32 %v893_v50, %v709_v49  ;;  %v742_v59 = vor.u32 %v900_v58, %v741_v57  ;;  %v721_v60 = vld [vmem:[%s1410_s0 + $0x48] sm:$0xf]  ;;  %v896_v61 = vld [vmem:[%s1410_s0 + $0x50] sm:$0xf0]  ;;  %v895_v62 = vld [vmem:[%s1410_s0 + $0x4c] sm:$0xf] }
  0x11   :  { %v231_v55 = vpack.c.b16 %v198_v51, %v198_v51  ;;  %v723_v63 = vld [vmem:[%s1410_s0 + $0x54] sm:$0xf0]  ;;  %v910_v0 = vld [vmem:[%s1410_s0 + $0xc4] sm:$0xf]  ;;  %v903_v6 = vld [vmem:[%s1410_s0 + $0x88] sm:$0xf0] }
  0x12   :  { %402 = vmatpush.bf16.msra.mxu0 %v919_v13  ;;  %v726_v3 = vor.u32 %v895_v62, %v723_v63  ;;  %v733_v8 = vld [vmem:[%s1410_s0 + $0x60] sm:$0xf]  ;;  %v899_v9 = vld [vmem:[%s1410_s0 + $0x68] sm:$0xf0]  ;;  %v735_v11 = vld [vmem:[%s1410_s0 + $0x6c] sm:$0xf0] }
  0x13   :  { %938 = vmatpush.bf16.msra.mxu3 %v919_v13  ;;  %465 = vmatpush.bf16.msra.mxu1 %v927_v14  ;;  %v795_v13 = vld [vmem:[%s1410_s0 + $0xe4] sm:$0xf0]  ;;  %v765_v17 = vld [vmem:[%s1410_s0 + $0x98] sm:$0xf]  ;;  %v906_v18 = vld [vmem:[%s1410_s0 + $0xa0] sm:$0xf0] }
  0x14   :  { %v747_v24 = vld [vmem:[%s1410_s0 + $0x84] sm:$0xf0]  ;;  %v777_v28 = vld [vmem:[%s1410_s0 + $0xb0] sm:$0xf]  ;;  %v909_v29 = vld [vmem:[%s1410_s0 + $0xb8] sm:$0xf0] }
  0x15   :  { %v905_v33 = vld [vmem:[%s1410_s0 + $0x98] sm:$0xf0]  ;;  %v759_v36 = vld [vmem:[%s1410_s0 + $0x9c] sm:$0xf0]  ;;  %v789_v40 = vld [vmem:[%s1410_s0 + $0xc8] sm:$0xf] }
  0x16   :  { %403 = vmatpush.bf16.msra.mxu0 %v918_v15  ;;  %v912_v41 = vld [vmem:[%s1410_s0 + $0xd0] sm:$0xf0]  ;;  %v907_v45 = vld [vmem:[%s1410_s0 + $0xac] sm:$0xf]  ;;  %v771_v46 = vld [vmem:[%s1410_s0 + $0xb4] sm:$0xf0] }
  0x17   :  { %939 = vmatpush.bf16.msra.mxu3 %v918_v15  ;;  %466 = vmatpush.bf16.msra.mxu1 %v926_v16  ;;  %v774_v49 = vor.u32 %v907_v45, %v771_v46  ;;  %v801_v50 = vld [vmem:[%s1410_s0 + $0xe0] sm:$0xf]  ;;  %v915_v51 = vld [vmem:[%s1410_s0 + $0xe8] sm:$0xf0] }
  0x18   :  { %v802_v53 = vor.u32 %v915_v51, %v801_v50  ;;  %v1249_v58 = vld [vmem:[%s1411_s2] ss:$0 sm:$0xff] }
  0x1a   :  { %876 = vmatmul.msk.bf16.gmra.mxu2 %vm364_vm0, %v706_v19  ;;  %404 = vmatpush.bf16.msra.mxu0 %v917_v20  ;;  %v766_v19 = vor.u32 %v906_v18, %v765_v17 }
  0x1b   :  { %940 = vmatpush.bf16.msra.mxu3 %v917_v20  ;;  %467 = vmatpush.bf16.msra.mxu1 %v925_v21  ;;  %v745_v20 = vld [vmem:[%s1410_s0 + $0x78] sm:$0xf] }
  0x1e   :  { %405 = vmatpush.bf16.msra.mxu0 %v916_v22 }
  0x1f   :  { %941 = vmatpush.bf16.msra.mxu3 %v916_v22  ;;  %468 = vmatpush.bf16.msra.mxu1 %v924_v23  ;;  %v199_v22 = vunpack.c.h.b16 %v58_v48 }
  0x21   :  { %406 = vmatmul.bf16.vlgmr.msra.gmra.mxu0 %v686_v30  ;;  %v232_v27 = vpack.c.b16 %v199_v22, %v199_v22  ;;  %v778_v30 = vor.u32 %v909_v29, %v777_v28 }
  0x22   :  { %446 = vmatmul.bf16.vlgmr.msra.gmra.mxu3 %v782_v31  ;;  %469 = vmatmul.bf16.vlgmr.msra.gmra.mxu1 %v690_v32  ;;  %v59_v31 = vld [vmem:[%s1410_s0 + $0xf8] sm:$0xf]  ;;  %v757_v32 = vld [vmem:[%s1410_s0 + $0x90] sm:$0xf] }
  0x23   :  { %942 = vmatpush.bf16.msrb.mxu3 %v985_v1  ;;  %v783_v1 = vld [vmem:[%s1410_s0 + $0xcc] sm:$0xf0]  ;;  %v200_v34 = vunpack.c.l.b16 %v59_v31  ;;  %v758_v37 = vor.u32 %v905_v33, %v757_v32 }
  0x25   :  { %v233_v39 = vpack.c.b16 %v200_v34, %v200_v34 }
  0x27   :  { %943 = vmatpush.bf16.msrb.mxu3 %v998_v4  ;;  %v786_v4 = vor.u32 %v910_v0, %v783_v1 }
  0x2a   :  { %877 = vmatmul.msk.bf16.gmra.mxu2 %vm364_vm0, %v718_v35  ;;  %v904_v35 = vld [vmem:[%s1410_s0 + $0x94] sm:$0xf] }
  0x2b   :  { %944 = vmatpush.bf16.msrb.mxu3 %v929_v10  ;;  %v898_v10 = vld [vmem:[%s1410_s0 + $0x64] sm:$0xf]  ;;  %v762_v38 = vor.u32 %v904_v35, %v759_v36 }
  0x2c   :  { %v738_v15 = vor.u32 %v898_v10, %v735_v11 }
  0x2f   :  { %945 = vmatpush.bf16.msrb.mxu3 %v928_v12  ;;  %v913_v12 = vld [vmem:[%s1410_s0 + $0xdc] sm:$0xf] }
  0x31   :  { %411 = vmatmul.bf16.gmra.mxu0 %v698_v42  ;;  %v790_v42 = vor.u32 %v912_v41, %v789_v40 }
  0x32   :  { %451 = vmatmul.bf16.gmra.mxu3 %v794_v43  ;;  %474 = vmatmul.bf16.gmra.mxu1 %v702_v44  ;;  %v769_v43 = vld [vmem:[%s1410_s0 + $0xa8] sm:$0xf]  ;;  %v908_v44 = vld [vmem:[%s1410_s0 + $0xb0] sm:$0xf0] }
  0x33   :  { %946 = vmatpush.bf16.msrb.mxu3 %v927_v14  ;;  %v734_v14 = vor.u32 %v899_v9, %v733_v8  ;;  %v770_v48 = vor.u32 %v908_v44, %v769_v43 }
  0x37   :  { %947 = vmatpush.bf16.msrb.mxu3 %v926_v16  ;;  %v798_v16 = vor.u32 %v913_v12, %v795_v13 }
  0x3a   :  { %878 = vmatmul.msk.bf16.gmra.mxu2 %vm364_vm0, %v730_v47 }
  0x3b   :  { %948 = vmatpush.bf16.msrb.mxu3 %v925_v21  ;;  %v902_v21 = vld [vmem:[%s1410_s0 + $0x80] sm:$0xf0] }
  0x3c   :  { %v746_v25 = vor.u32 %v902_v21, %v745_v20 }
  0x3f   :  { %949 = vmatpush.bf16.msrb.mxu3 %v924_v23  ;;  %v901_v23 = vld [vmem:[%s1410_s0 + $0x7c] sm:$0xf] }
  0x40   :  { %v750_v26 = vor.u32 %v901_v23, %v747_v24 }
  0x41   :  { %416 = vmatmul.bf16.gmra.mxu0 %v710_v54 }
  0x42   :  { %456 = vmatmul.bf16.gmra.mxu3 %v231_v55  ;;  %479 = vmatmul.bf16.gmra.mxu1 %v714_v56 }
  0x43   :  { %950 = vmatpush.bf16.msra.mxu3 %v990_v2  ;;  %v722_v2 = vor.u32 %v896_v61, %v721_v60  ;;  %v1254_v60 = vld [vmem:[%s1412_s3] ss:$0 sm:$0xff] }
  0x47   :  { %951 = vmatpush.bf16.msra.mxu3 %v1005_v5  ;;  %v753_v5 = vld [vmem:[%s1410_s0 + $0x80] sm:$0xf] }
  0x48   :  { %v754_v7 = vor.u32 %v903_v6, %v753_v5 }
  0x4a   :  { %879 = vmatmul.msk.bf16.gmra.mxu2 %vm364_vm0, %v742_v59 }
  0x51   :  { %421 = vmatmul.bf16.gmra.mxu0 %v722_v2 }
  0x52   :  { %484 = vmatmul.bf16.gmra.mxu1 %v726_v3  ;;  %509 = vmatmul.bf16.vlgmr.msrb.gmra.mxu3 %v786_v4 }
  0x5a   :  { %880 = vmatmul.msk.bf16.gmra.mxu2 %vm364_vm0, %v754_v7 }
  0x61   :  { %426 = vmatmul.bf16.gmra.mxu0 %v734_v14 }
  0x62   :  { %489 = vmatmul.bf16.gmra.mxu1 %v738_v15  ;;  %514 = vmatmul.bf16.gmra.mxu3 %v798_v16 }
  0x6a   :  { %881 = vmatmul.msk.bf16.gmra.mxu2 %vm364_vm0, %v766_v19 }
  0x71   :  { %431 = vmatmul.bf16.gmra.mxu0 %v746_v25 }
  0x72   :  { %494 = vmatmul.bf16.gmra.mxu1 %v750_v26  ;;  %519 = vmatmul.bf16.gmra.mxu3 %v232_v27 }
  0x7a   :  { %882 = vmatmul.msk.bf16.gmra.mxu2 %vm364_vm0, %v778_v30 }
  0x81   :  { %436 = vmatmul.bf16.gmra.mxu0 %v758_v37 }
  0x82   :  { %499 = vmatmul.bf16.gmra.mxu1 %v762_v38  ;;  %885 = vmatmul.msk.bf16.vlgmr.msra.gmra.mxu3 %vm364_vm0, %v233_v39 }
  0x8a   :  { %883 = vmatmul.msk.bf16.gmra.mxu2 %vm364_vm0, %v790_v42 }
  0x8d   :  { %v533_v47 = vpop.f32.mrf.mxu2 }
  0x91   :  { %441 = vmatmul.bf16.gmra.mxu0 %v770_v48 }
  0x92   :  { %504 = vmatmul.bf16.gmra.mxu1 %v774_v49 }
  0x95   :  { %v535_v52 = vpop.f32.mrf.mxu2 }
  0x9a   :  { %884 = vmatmul.msk.bf16.gmra.mxu2 %vm364_vm0, %v802_v53 }
  0x9d   :  { %v538_v54 = vpop.f32.mrf.mxu2 }
  0x9e   :  { %v407_v55 = vpop.f32.mrf.mxu0 }
  0x9f   :  { %v470_v56 = vpop.f32.mrf.mxu1 }
  0xa0   :  { %v471_v57 = vadd.f32 %v470_v56, %v407_v55 }
  0xa2   :  { %v534_v59 = vadd.f32 %v533_v47, %v471_v57 }
  0xa4   :  { %v591_v61 = vmul.f32 %v1249_v58, %v534_v59 }
  0xa5   :  { %v1257_v62 = vpop.f32.mrf.mxu3  ;;  %v540_v63 = vpop.f32.mrf.mxu2 }
  0xa6   :  { %v616_v0 = vadd.f32 %v1254_v60, %v591_v61  ;;  %v409_v1 = vpop.f32.mrf.mxu0 }
  0xa7   :  { %v472_v2 = vpop.f32.mrf.mxu1 }
  0xa8   :  { %v637_v3 = vmax.f32 %v616_v0, 0.0  ;;  %v473_v4 = vadd.f32 %v472_v2, %v409_v1 }
  0xaa   :  { %658 = vst.msk [vmem:[%s1413_s4] sm:$0xff] %vm364_vm0, %v637_v3  ;;  %v536_v5 = vadd.f32 %v535_v52, %v473_v4 }
  0xac   :  { %v592_v6 = vmul.f32 %v1249_v58, %v536_v5 }
  0xad   :  { %v1265_v7 = vpop.f32.mrf.mxu3  ;;  %v543_v8 = vpop.f32.mrf.mxu2 }
  0xae   :  { %v617_v9 = vadd.f32 %v1254_v60, %v592_v6  ;;  %v412_v10 = vpop.f32.mrf.mxu0 }
  0xaf   :  { %v475_v11 = vpop.f32.mrf.mxu1 }
  0xb0   :  { %v638_v12 = vmax.f32 %v617_v9, 0.0  ;;  %v476_v13 = vadd.f32 %v475_v11, %v412_v10 }
  0xb2   :  { %659 = vst.msk [vmem:[%s1413_s4 + $0x8] sm:$0xff] %vm364_vm0, %v638_v12  ;;  %v539_v14 = vadd.f32 %v538_v54, %v476_v13 }
  0xb4   :  { %v593_v15 = vmul.f32 %v1249_v58, %v539_v14 }
  0xb5   :  { %v1273_v16 = vpop.f32.mrf.mxu3  ;;  %v545_v17 = vpop.f32.mrf.mxu2 }
  0xb6   :  { %v618_v18 = vadd.f32 %v1254_v60, %v593_v15  ;;  %v414_v19 = vpop.f32.mrf.mxu0 }
  0xb7   :  { %v477_v20 = vpop.f32.mrf.mxu1 }
  0xb8   :  { %v639_v21 = vmax.f32 %v618_v18, 0.0  ;;  %v478_v22 = vadd.f32 %v477_v20, %v414_v19 }
  0xba   :  { %660 = vst.msk [vmem:[%s1413_s4 + $0x10] sm:$0xff] %vm364_vm0, %v639_v21  ;;  %v541_v23 = vadd.f32 %v540_v63, %v478_v22 }
  0xbc   :  { %v594_v24 = vmul.f32 %v1249_v58, %v541_v23 }
  0xbd   :  { %v1281_v25 = vpop.f32.mrf.mxu3  ;;  %v548_v26 = vpop.f32.mrf.mxu2 }
  0xbe   :  { %v619_v27 = vadd.f32 %v1254_v60, %v594_v24  ;;  %v417_v28 = vpop.f32.mrf.mxu0 }
  0xbf   :  { %v480_v29 = vpop.f32.mrf.mxu1 }
  0xc0   :  { %v640_v30 = vmax.f32 %v619_v27, 0.0  ;;  %v481_v31 = vadd.f32 %v480_v29, %v417_v28 }
  0xc2   :  { %661 = vst.msk [vmem:[%s1413_s4 + $0x18] sm:$0xff] %vm364_vm0, %v640_v30  ;;  %v544_v32 = vadd.f32 %v543_v8, %v481_v31 }
  0xc4   :  { %v595_v33 = vmul.f32 %v1249_v58, %v544_v32 }
  0xc5   :  { %v1289_v34 = vpop.f32.mrf.mxu3  ;;  %v550_v35 = vpop.f32.mrf.mxu2 }
  0xc6   :  { %v620_v36 = vadd.f32 %v1254_v60, %v595_v33  ;;  %v419_v37 = vpop.f32.mrf.mxu0 }
  0xc7   :  { %v482_v38 = vpop.f32.mrf.mxu1 }
  0xc8   :  { %v641_v39 = vmax.f32 %v620_v36, 0.0  ;;  %v483_v40 = vadd.f32 %v482_v38, %v419_v37 }
  0xca   :  { %662 = vst.msk [vmem:[%s1413_s4 + $0x20] sm:$0xff] %vm364_vm0, %v641_v39  ;;  %v546_v41 = vadd.f32 %v545_v17, %v483_v40 }
  0xcc   :  { %v596_v42 = vmul.f32 %v1249_v58, %v546_v41 }
  0xcd   :  { %v459_v43 = vpop.f32.mrf.mxu3  ;;  %v553_v44 = vpop.f32.mrf.mxu2 }
  0xce   :  { %v621_v45 = vadd.f32 %v1254_v60, %v596_v42  ;;  %v422_v46 = vpop.f32.mrf.mxu0 }
  0xcf   :  { %v485_v47 = vpop.f32.mrf.mxu1 }
  0xd0   :  { %v642_v48 = vmax.f32 %v621_v45, 0.0  ;;  %v486_v49 = vadd.f32 %v485_v47, %v422_v46 }
  0xd2   :  { %663 = vst.msk [vmem:[%s1413_s4 + $0x28] sm:$0xff] %vm364_vm0, %v642_v48  ;;  %v549_v50 = vadd.f32 %v548_v26, %v486_v49 }
  0xd4   :  { %v597_v51 = vmul.f32 %v1249_v58, %v549_v50 }
  0xd5   :  { %v1303_v52 = vpop.f32.mrf.mxu3  ;;  %v555_v53 = vpop.f32.mrf.mxu2 }
  0xd6   :  { %v622_v54 = vadd.f32 %v1254_v60, %v597_v51  ;;  %v424_v55 = vpop.f32.mrf.mxu0 }
  0xd7   :  { %v487_v56 = vpop.f32.mrf.mxu1 }
  0xd8   :  { %v643_v57 = vmax.f32 %v622_v54, 0.0  ;;  %v488_v59 = vadd.f32 %v487_v56, %v424_v55 }
  0xda   :  { %664 = vst.msk [vmem:[%s1413_s4 + $0x30] sm:$0xff] %vm364_vm0, %v643_v57  ;;  %v551_v61 = vadd.f32 %v550_v35, %v488_v59 }
  0xdc   :  { %v598_v63 = vmul.f32 %v1249_v58, %v551_v61 }
  0xdd   :  { %v1311_v0 = vpop.f32.mrf.mxu3  ;;  %v558_v1 = vpop.f32.mrf.mxu2 }
  0xde   :  { %v623_v2 = vadd.f32 %v1254_v60, %v598_v63  ;;  %v427_v3 = vpop.f32.mrf.mxu0 }
  0xdf   :  { %v490_v4 = vpop.f32.mrf.mxu1 }
  0xe0   :  { %v644_v5 = vmax.f32 %v623_v2, 0.0  ;;  %v491_v6 = vadd.f32 %v490_v4, %v427_v3 }
  0xe2   :  { %665 = vst.msk [vmem:[%s1413_s4 + $0x38] sm:$0xff] %vm364_vm0, %v644_v5  ;;  %v554_v8 = vadd.f32 %v553_v44, %v491_v6 }
  0xe4   :  { %v599_v9 = vmul.f32 %v1249_v58, %v554_v8 }
  0xe5   :  { %v1319_v10 = vpop.f32.mrf.mxu3  ;;  %v560_v11 = vpop.f32.mrf.mxu2 }
  0xe6   :  { %v624_v12 = vadd.f32 %v1254_v60, %v599_v9  ;;  %v429_v13 = vpop.f32.mrf.mxu0 }
  0xe7   :  { %v492_v14 = vpop.f32.mrf.mxu1 }
  0xe8   :  { %v645_v15 = vmax.f32 %v624_v12, 0.0  ;;  %v493_v17 = vadd.f32 %v492_v14, %v429_v13 }
  0xea   :  { %666 = vst.msk [vmem:[%s1413_s4 + $0x40] sm:$0xff] %vm364_vm0, %v645_v15  ;;  %v556_v18 = vadd.f32 %v555_v53, %v493_v17  ;;  %v513_v15 = vadd.f32 %v1311_v0, %v1265_v7 }
  0xec   :  { %v600_v19 = vmul.f32 %v1249_v58, %v556_v18 }
  0xed   :  { %v1327_v20 = vpop.f32.mrf.mxu3  ;;  %v563_v21 = vpop.f32.mrf.mxu2 }
  0xee   :  { %v625_v22 = vadd.f32 %v1254_v60, %v600_v19  ;;  %v432_v23 = vpop.f32.mrf.mxu0 }
  0xef   :  { %v495_v24 = vpop.f32.mrf.mxu1 }
  0xf0   :  { %v646_v26 = vmax.f32 %v625_v22, 0.0  ;;  %v496_v27 = vadd.f32 %v495_v24, %v432_v23 }
  0xf2   :  { %667 = vst.msk [vmem:[%s1413_s4 + $0x48] sm:$0xff] %vm364_vm0, %v646_v26  ;;  %v559_v28 = vadd.f32 %v558_v1, %v496_v27  ;;  %v511_v1 = vadd.f32 %v1303_v52, %v1257_v62 }
  0xf4   :  { %v601_v29 = vmul.f32 %v1249_v58, %v559_v28 }
  0xf5   :  { %v520_v30 = vpop.f32.mrf.mxu3  ;;  %v565_v31 = vpop.f32.mrf.mxu2 }
  0xf6   :  { %v626_v32 = vadd.f32 %v1254_v60, %v601_v29  ;;  %v434_v33 = vpop.f32.mrf.mxu0  ;;  %v521_v48 = vadd.f32 %v520_v30, %v1289_v34  ;;  %v516_v29 = vadd.f32 %v1319_v10, %v1273_v16  ;;  %v518_v10 = vadd.f32 %v1327_v20, %v1281_v25 }
  0xf7   :  { %v497_v35 = vpop.f32.mrf.mxu1 }
  0xf8   :  { %v647_v36 = vmax.f32 %v626_v32, 0.0  ;;  %v498_v37 = vadd.f32 %v497_v35, %v434_v33 }
  0xfa   :  { %668 = vst.msk [vmem:[%s1413_s4 + $0x50] sm:$0xff] %vm364_vm0, %v647_v36  ;;  %v561_v38 = vadd.f32 %v560_v11, %v498_v37 }
  0xfc   :  { %v602_v39 = vmul.f32 %v1249_v58, %v561_v38 }
  0xfd   :  { %v522_v40 = vpop.f32.mrf.mxu3  ;;  %v568_v41 = vpop.f32.mrf.mxu2 }
  0xfe   :  { %v627_v42 = vadd.f32 %v1254_v60, %v602_v39  ;;  %v437_v43 = vpop.f32.mrf.mxu0 }
  0xff   :  { %v500_v44 = vpop.f32.mrf.mxu1 }
 0x100   :  { %v648_v45 = vmax.f32 %v627_v42, 0.0  ;;  %v501_v46 = vadd.f32 %v500_v44, %v437_v43 }
 0x102   :  { %669 = vst.msk [vmem:[%s1413_s4 + $0x58] sm:$0xff] %vm364_vm0, %v648_v45  ;;  %v564_v47 = vadd.f32 %v563_v21, %v501_v46 }
 0x104   :  { %v603_v49 = vmul.f32 %v1249_v58, %v564_v47 }
 0x105   :  { %v570_v50 = vpop.f32.mrf.mxu2  ;;  %v583_v51 = vpop.f32.mrf.mxu3 }
 0x106   :  { %v628_v53 = vadd.f32 %v1254_v60, %v603_v49  ;;  %v584_v54 = vadd.f32 %v583_v51, %v521_v48  ;;  %v439_v55 = vpop.f32.mrf.mxu0 }
 0x107   :  { %v502_v56 = vpop.f32.mrf.mxu1 }
 0x108   :  { %v649_v57 = vmax.f32 %v628_v53, 0.0  ;;  %v611_v59 = vmul.f32 %v1249_v58, %v584_v54  ;;  %v503_v61 = vadd.f32 %v502_v56, %v439_v55 }
 0x10a   :  { %670 = vst.msk [vmem:[%s1413_s4 + $0x60] sm:$0xff] %vm364_vm0, %v649_v57  ;;  %v636_v34 = vadd.f32 %v1254_v60, %v611_v59  ;;  %v566_v63 = vadd.f32 %v565_v31, %v503_v61 }
 0x10c   :  { %v657_v2 = vmax.f32 %v636_v34, 0.0  ;;  %v604_v3 = vmul.f32 %v1249_v58, %v566_v63 }
 0x10d   :  { %v573_v4 = vpop.f32.mrf.mxu2  ;;  %v585_v5 = vpop.f32.mrf.mxu3 }
 0x10e   :  { %678 = vst.msk [vmem:[%s1413_s4 + $0xa0] sm:$0xff] %vm364_vm0, %v657_v2  ;;  %v629_v6 = vadd.f32 %v1254_v60, %v604_v3  ;;  %v574_v8 = vadd.f32 %v573_v4, %v511_v1  ;;  %v442_v9 = vpop.f32.mrf.mxu0 }
 0x10f   :  { %v505_v11 = vpop.f32.mrf.mxu1 }
 0x110   :  { %v650_v12 = vmax.f32 %v629_v6, 0.0  ;;  %v607_v13 = vmul.f32 %v1249_v58, %v574_v8  ;;  %v506_v14 = vadd.f32 %v505_v11, %v442_v9 }
 0x112   :  { %671 = vst.msk [vmem:[%s1413_s4 + $0x68] sm:$0xff] %vm364_vm0, %v650_v12  ;;  %v632_v62 = vadd.f32 %v1254_v60, %v607_v13  ;;  %v569_v52 = vadd.f32 %v568_v41, %v506_v14 }
 0x114   :  { %v653_v17 = vmax.f32 %v632_v62, 0.0  ;;  %v605_v18 = vmul.f32 %v1249_v58, %v569_v52 }
 0x115   :  { %v575_v19 = vpop.f32.mrf.mxu2 }
 0x116   :  { %674 = vst.msk [vmem:[%s1413_s4 + $0x80] sm:$0xff] %vm364_vm0, %v653_v17  ;;  %v630_v21 = vadd.f32 %v1254_v60, %v605_v18  ;;  %v576_v22 = vadd.f32 %v575_v19, %v513_v15  ;;  %v444_v23 = vpop.f32.mrf.mxu0 }
 0x117   :  { %v507_v24 = vpop.f32.mrf.mxu1 }
 0x118   :  { %v651_v26 = vmax.f32 %v630_v21, 0.0  ;;  %v608_v27 = vmul.f32 %v1249_v58, %v576_v22  ;;  %v508_v28 = vadd.f32 %v507_v24, %v444_v23 }
 0x11a   :  { %672 = vst.msk [vmem:[%s1413_s4 + $0x70] sm:$0xff] %vm364_vm0, %v651_v26  ;;  %v633_v7 = vadd.f32 %v1254_v60, %v608_v27  ;;  %v571_v0 = vadd.f32 %v570_v50, %v508_v28 }
 0x11c   :  { %v654_v30 = vmax.f32 %v633_v7, 0.0  ;;  %v606_v31 = vmul.f32 %v1249_v58, %v571_v0 }
 0x11d   :  { %v578_v32 = vpop.f32.mrf.mxu2 }
 0x11e   :  { %675 = vst.msk [vmem:[%s1413_s4 + $0x88] sm:$0xff] %vm364_vm0, %v654_v30  ;;  %v631_v33 = vadd.f32 %v1254_v60, %v606_v31  ;;  %v579_v35 = vadd.f32 %v578_v32, %v516_v29 }
 0x120   :  { %v652_v36 = vmax.f32 %v631_v33, 0.0  ;;  %v609_v37 = vmul.f32 %v1249_v58, %v579_v35 }
 0x122   :  { %673 = vst.msk [vmem:[%s1413_s4 + $0x78] sm:$0xff] %vm364_vm0, %v652_v36  ;;  %v634_v16 = vadd.f32 %v1254_v60, %v609_v37 }
 0x124   :  { %v655_v38 = vmax.f32 %v634_v16, 0.0 }
 0x125   :  { %v580_v39 = vpop.f32.mrf.mxu2 }
 0x126   :  { %676 = vst.msk [vmem:[%s1413_s4 + $0x90] sm:$0xff] %vm364_vm0, %v655_v38  ;;  %v581_v40 = vadd.f32 %v580_v39, %v518_v10 }
 0x128   :  { %v610_v41 = vmul.f32 %v1249_v58, %v581_v40 }
 0x12a   :  { %v635_v42 = vadd.f32 %v1254_v60, %v610_v41 }
 0x12c   :  { %v656_v43 = vmax.f32 %v635_v42, 0.0 }
 0x12e   :  { %677 = vst.msk [vmem:[%s1413_s4 + $0x98] sm:$0xff] %vm364_vm0, %v656_v43 }

// kernel: rnet_forward.7
= control target key start
LH: loop header
LB: loop body
LE: loop exit
PB: predicated region body
PF: predicated region fallthrough
CT: control target
= control target key end

     0   :  { %vm60_vm0 = vcmask 523264   ;;  %v176_v21 = vlaneseq  ;;  %s375_s1 = inlined_call_operand.vmem [shape: bf16[64,128], index: 1, kind: input, shape index: {}]   ;;  %s376_s4 = inlined_call_operand.vmem [shape: bf16[128,128], index: 4, kind: input, shape index: {}]   ;;  %s377_s2 = inlined_call_operand.vmem [shape: f32[1,128], index: 2, kind: input, shape index: {}]   ;;  %s378_s0 = inlined_call_operand.vmem [shape: bf16[8,64], index: 0, kind: input, shape index: {}]   ;;  %s379_s3 = inlined_call_operand.vmem [shape: f32[1,128], index: 3, kind: input, shape index: {}]   ;;  %s380_s5 = inlined_call_operand.vmem [shape: f32[1,128], index: 5, kind: input, shape index: {}]   ;;  %s381_s6 = inlined_call_operand.vmem [shape: f32[1,128], index: 6, kind: input, shape index: {}]   ;;  %s382_s7 = inlined_call_operand.vmem [shape: f32[8,128], index: 7, kind: output, shape index: {}]  }
   0x1   :  { %v261_v0 = vld [vmem:[%s375_s1 + $0x18] sm:$0xff]  ;;  %v260_v2 = vld [vmem:[%s375_s1 + $0x10] sm:$0xff]  ;;  %v259_v4 = vld [vmem:[%s375_s1 + $0x8] sm:$0xff] }
   0x2   :  { %v269_v1 = vld [vmem:[%s376_s4 + $0x38] sm:$0xff]  ;;  %68 = vmatpush.bf16.msra.mxu0 %v261_v0  ;;  %v268_v3 = vld [vmem:[%s376_s4 + $0x30] sm:$0xff]  ;;  %v267_v5 = vld [vmem:[%s376_s4 + $0x28] sm:$0xff]  ;;  %v177_v23 = vand.u32 127, %v176_v21 }
   0x3   :  { %153 = vmatpush.bf16.msra.mxu1 %v269_v1  ;;  %v258_v6 = vld [vmem:[%s375_s1] sm:$0xff]  ;;  %v265_v9 = vld [vmem:[%s376_s4 + $0x18] sm:$0xff]  ;;  %v264_v10 = vld [vmem:[%s376_s4 + $0x10] sm:$0xff] }
   0x4   :  { %v266_v7 = vld [vmem:[%s376_s4 + $0x20] sm:$0xff]  ;;  %v263_v11 = vld [vmem:[%s376_s4 + $0x8] sm:$0xff]  ;;  %vm178_vm1 = vcmp.lt.s32.totalorder %v177_v23, 2 }
   0x5   :  { %v27_v8 = vld [vmem:[%s378_s0] sm:$0xf] }
   0x6   :  { %69 = vmatpush.bf16.msra.mxu0 %v260_v2  ;;  %v262_v12 = vld [vmem:[%s376_s4] sm:$0xff] }
   0x7   :  { %154 = vmatpush.bf16.msra.mxu1 %v268_v3  ;;  %v270_v13 = vld [vmem:[%s377_s2] ss:$0 sm:$0xff] }
   0x8   :  { %v271_v14 = vld [vmem:[%s379_s3] ss:$0 sm:$0xff] }
   0x9   :  { %v272_v22 = vld [vmem:[%s380_s5] ss:$0 sm:$0xff] }
   0xa   :  { %70 = vmatpush.bf16.msra.mxu0 %v259_v4  ;;  %v273_v24 = vld [vmem:[%s381_s6] ss:$0 sm:$0xff] }
   0xb   :  { %155 = vmatpush.bf16.msra.mxu1 %v267_v5 }
   0xe   :  { %71 = vmatpush.bf16.msra.mxu0 %v258_v6 }
   0xf   :  { %156 = vmatpush.bf16.msra.mxu1 %v266_v7 }
  0x11   :  { %225 = vmatmul.msk.bf16.vlgmr.msra.gmra.mxu0 %vm60_vm0, %v27_v8 }
  0x13   :  { %157 = vmatpush.bf16.msra.mxu1 %v265_v9 }
  0x17   :  { %158 = vmatpush.bf16.msra.mxu1 %v264_v10 }
  0x1b   :  { %159 = vmatpush.bf16.msra.mxu1 %v263_v11 }
  0x1f   :  { %160 = vmatpush.bf16.msra.mxu1 %v262_v12 }
  0x8e   :  { %v73_v15 = vpop.f32.mrf.mxu0 }
  0x8f   :  { %v81_v16 = vmul.f32 %v270_v13, %v73_v15 }
  0x91   :  { %v86_v17 = vadd.f32 %v271_v14, %v81_v16 }
  0x93   :  { %v87_v18 = vmax.f32 %v86_v17, 0.0 }
  0x95   :  { %v88_v19 = vpack.c.bf16 %v87_v18, %v87_v18 }
  0x96   :  { %v75_v20 = vpop.f32.mrf.mxu0 }
  0x97   :  { %161 = vmatmul.bf16.vlgmr.msra.gmra.mxu1 %v88_v19 }
 0x114   :  { %v162_v25 = vpop.f32.mrf.mxu1 }
 0x115   :  { %v170_v26 = vmul.f32 %v272_v22, %v162_v25 }
 0x117   :  { %v175_v27 = vadd.f32 %v273_v24, %v170_v26 }
 0x119   :  { %v179_v28 = vsel %vm178_vm1, %v175_v27, -inf }
 0x11a   :  { %180 = vmax.xlane.f32.xlu0 %v179_v28 }
 0x11c   :  { %v164_v29 = vpop.f32.mrf.mxu1 }
 0x18d   :  { %v181_v30 = vpop.xlane.xlu0 %180 }
 0x18e   :  { %v182_v31 = vsub.f32 %v179_v28, %v181_v30 }
 0x190   :  { %v183_v32 = vmul.f32 1.442695, %v182_v31 }
 0x192   :  { %274 = vpow2.f32 %v183_v32 }
 0x198   :  { %v275_v33 = vpop.eup %274 }
 0x199   :  { %v185_v34 = vsel %vm178_vm1, %v275_v33, 0.0 }
 0x19a   :  { %186 = vadd.xlane.f32.xlu0 %v185_v34 }
 0x20d   :  { %v187_v35 = vpop.xlane.xlu0 %186 }
 0x20e   :  { %276 = vrcp.f32 %v187_v35  ;;  %v199_v39 = vand.u32 2147483648, %v187_v35  ;;  %v197_v41 = vand.u32 2147483647, %v187_v35  ;;  %vm193_vm3 = vweird.f32 %v187_v35 }
 0x210   :  { %v200_v43 = vor.u32 1.1754944e-38, %v199_v39  ;;  %vm198_vm5 = vcmp.eq.f32.partialorder %v197_v41, 8.507059e+37 }
 0x214   :  { %v277_v36 = vpop.eup %276 }
 0x215   :  { %v189_v37 = vmul.f32 %v277_v36, %v187_v35  ;;  %vm194_vm2 = vweird.f32 %v277_v36 }
 0x216   :  { %vm195_vm4 = vmor %vm193_vm3, %vm194_vm2 }
 0x217   :  { %v190_v38 = vsub.f32 1.0, %v189_v37 }
 0x219   :  { %v191_v40 = vmul.f32 %v277_v36, %v190_v38 }
 0x21b   :  { %v192_v42 = vadd.f32 %v277_v36, %v191_v40 }
 0x21d   :  { %v196_v44 = vsel %vm195_vm4, %v277_v36, %v192_v42 }
 0x21e   :  { %v201_v45 = vsel %vm198_vm5, %v200_v43, %v196_v44 }
 0x21f   :  { %v202_v46 = vmul.f32 %v201_v45, %v185_v34 }
 0x221   :  { %v203_v47 = vsel %vm178_vm1, %v202_v46, %v175_v27 }
 0x222   :  { %204 = vst [vmem:[%s382_s7] sm:$0xff] %v203_v47 }

// kernel: rnet_forward.6
= control target key start
LH: loop header
LB: loop body
LE: loop exit
PB: predicated region body
PF: predicated region fallthrough
CT: control target
= control target key end

     0   :  { %vm174_vm0 = vcmask 261120   ;;  %vm228_vm1 = vcmask 523264   ;;  %s421_s1 = inlined_call_operand.vmem [shape: bf16[288,64], index: 1, kind: input, shape index: {}]   ;;  %s422_s0 = inlined_call_operand.vmem [shape: bf16[8,288], index: 0, kind: input, shape index: {}]   ;;  %s423_s2 = inlined_call_operand.vmem [shape: f32[1,64], index: 2, kind: input, shape index: {}]   ;;  %s424_s3 = inlined_call_operand.vmem [shape: f32[1,64], index: 3, kind: input, shape index: {}]   ;;  %s425_s4 = inlined_call_operand.vmem [shape: f32[8,64], index: 4, kind: output, shape index: {}]  }
   0x1   :  { %v314_v0 = vld [vmem:[%s421_s1 + $0x38] sm:$0xff]  ;;  %v313_v2 = vld [vmem:[%s421_s1 + $0x30] sm:$0xff]  ;;  %v324_v4 = vld [vmem:[%s421_s1 + $0x88] sm:$0xff] }
   0x2   :  { %v322_v1 = vld [vmem:[%s421_s1 + $0x78] sm:$0xff]  ;;  %178 = vmatpush.bf16.msra.mxu0 %v314_v0  ;;  %v321_v3 = vld [vmem:[%s421_s1 + $0x70] sm:$0xff]  ;;  %210 = vmatpush.bf16.msra.mxu2 %v324_v4  ;;  %v323_v5 = vld [vmem:[%s421_s1 + $0x80] sm:$0xff] }
   0x3   :  { %191 = vmatpush.bf16.msra.mxu1 %v322_v1  ;;  %v19_v6 = vld [vmem:[%s422_s0 + $0x8] sm:$0xf]  ;;  %v311_v11 = vld [vmem:[%s421_s1 + $0x20] sm:$0xff]  ;;  %v310_v13 = vld [vmem:[%s421_s1 + $0x18] sm:$0xff] }
   0x4   :  { %v60_v7 = vunpack.c.l.b16 %v19_v6  ;;  %v312_v8 = vld [vmem:[%s421_s1 + $0x28] sm:$0xff]  ;;  %v319_v12 = vld [vmem:[%s421_s1 + $0x60] sm:$0xff]  ;;  %v318_v14 = vld [vmem:[%s421_s1 + $0x58] sm:$0xff] }
   0x5   :  { %v320_v9 = vld [vmem:[%s421_s1 + $0x68] sm:$0xff]  ;;  %v309_v15 = vld [vmem:[%s421_s1 + $0x10] sm:$0xff]  ;;  %v18_v19 = vld [vmem:[%s422_s0] sm:$0xff] }
   0x6   :  { %179 = vmatpush.bf16.msra.mxu0 %v313_v2  ;;  %v63_v10 = vpack.c.b16 %v60_v7, %v60_v7  ;;  %211 = vmatpush.bf16.msra.mxu2 %v323_v5  ;;  %v317_v16 = vld [vmem:[%s421_s1 + $0x50] sm:$0xff]  ;;  %v308_v17 = vld [vmem:[%s421_s1 + $0x8] sm:$0xff]  ;;  %v58_v20 = vunpack.c.l.b16 %v18_v19  ;;  %v59_v21 = vunpack.c.h.b16 %v18_v19  ;;  %v307_v22 = vld [vmem:[%s421_s1] sm:$0xff] }
   0x7   :  { %192 = vmatpush.bf16.msra.mxu1 %v321_v3  ;;  %v316_v18 = vld [vmem:[%s421_s1 + $0x48] sm:$0xff]  ;;  %v315_v23 = vld [vmem:[%s421_s1 + $0x40] sm:$0xff] }
   0x8   :  { %v61_v24 = vpack.c.b16 %v58_v20, %v58_v20  ;;  %v62_v25 = vpack.c.b16 %v59_v21, %v59_v21  ;;  %v325_v31 = vld [vmem:[%s423_s2] ss:$0 sm:$0xff] }
   0x9   :  { %306 = vmatmul.msk.bf16.vlgmr.msra.gmra.mxu2 %vm174_vm0, %v63_v10  ;;  %v326_v33 = vld [vmem:[%s424_s3] ss:$0 sm:$0xff] }
   0xa   :  { %180 = vmatpush.bf16.msra.mxu0 %v312_v8 }
   0xb   :  { %193 = vmatpush.bf16.msra.mxu1 %v320_v9 }
   0xe   :  { %181 = vmatpush.bf16.msra.mxu0 %v311_v11 }
   0xf   :  { %194 = vmatpush.bf16.msra.mxu1 %v319_v12 }
  0x12   :  { %182 = vmatpush.bf16.msra.mxu0 %v310_v13 }
  0x13   :  { %195 = vmatpush.bf16.msra.mxu1 %v318_v14 }
  0x16   :  { %183 = vmatpush.bf16.msra.mxu0 %v309_v15 }
  0x17   :  { %196 = vmatpush.bf16.msra.mxu1 %v317_v16 }
  0x1a   :  { %184 = vmatpush.bf16.msra.mxu0 %v308_v17 }
  0x1b   :  { %197 = vmatpush.bf16.msra.mxu1 %v316_v18 }
  0x1e   :  { %185 = vmatpush.bf16.msra.mxu0 %v307_v22 }
  0x1f   :  { %198 = vmatpush.bf16.msra.mxu1 %v315_v23 }
  0x21   :  { %186 = vmatmul.bf16.vlgmr.msra.gmra.mxu0 %v61_v24 }
  0x22   :  { %199 = vmatmul.bf16.vlgmr.msra.gmra.mxu1 %v62_v25 }
  0x8c   :  { %v213_v26 = vpop.f32.mrf.mxu2 }
  0x94   :  { %v215_v27 = vpop.f32.mrf.mxu2 }
  0x9e   :  { %v187_v28 = vpop.f32.mrf.mxu0 }
  0x9f   :  { %v200_v29 = vpop.f32.mrf.mxu1 }
  0xa0   :  { %v201_v30 = vadd.f32 %v200_v29, %v187_v28 }
  0xa2   :  { %v214_v32 = vadd.f32 %v213_v26, %v201_v30 }
  0xa4   :  { %v221_v34 = vmul.f32 %v325_v31, %v214_v32 }
  0xa6   :  { %v226_v35 = vadd.f32 %v326_v33, %v221_v34  ;;  %v189_v36 = vpop.f32.mrf.mxu0 }
  0xa7   :  { %v202_v37 = vpop.f32.mrf.mxu1 }
  0xa8   :  { %v227_v38 = vmax.f32 %v226_v35, 0.0 }
  0xaa   :  { %229 = vst.msk [vmem:[%s425_s4] sm:$0xff] %vm228_vm1, %v227_v38 }

</bundles_post_ra>
